<compile_context>
chip_gen: v7x
topology: tpu7x:2x2x1
jax: 0.10.0
libtpu: 0.0.40
codegen_flags: <defaults>
</compile_context>

<pallas_src>
import math
import functools

import jax
import jax.numpy as jnp
from jax import lax
from jax.experimental import pallas as pl
from jax.experimental.pallas import tpu as pltpu


def _round_up(x, m):
    return (x + m - 1) // m * m


def _symmetric_attention_kernel(
    mod1_ref, mod2_ref,            # (1, L_pad, D_pad) f32  (full sequence per batch)
    mod1_qt_ref, mod2_qt_ref,      # (1, TQ, D_pad)   f32  (current query tile)
    wkv_x_ref, wkv_y_ref,          # (D_pad, 2*A_pad) matmul_dtype  [Wk | Wv]
    wq_x_ref, wq_y_ref,            # (D_pad, A_pad)   matmul_dtype
    out1_ref, out2_ref,            # (1, TQ, A_pad)   f32
    k1_s, v1_s, k2_s, v2_s,        # (L_pad, A_pad)   matmul_dtype scratch
    *, dk, residual, a_pad, l_valid, l_pad, matmul_dtype,
):
    qi = pl.program_id(1)

    # Project k/v for the whole sequence once per batch element (qi == 0),
    # cache in VMEM scratch and reuse for every query tile of this batch.
    @pl.when(qi == 0)
    def _project_kv():
        x = mod1_ref[0].astype(matmul_dtype)            # (L_pad, D_pad)
        y = mod2_ref[0].astype(matmul_dtype)
        pkv_x = jnp.dot(x, wkv_x_ref[...], preferred_element_type=jnp.float32)
        pkv_y = jnp.dot(y, wkv_y_ref[...], preferred_element_type=jnp.float32)
        k1_s[...] = pkv_x[:, :a_pad].astype(matmul_dtype)
        v1_s[...] = pkv_x[:, a_pad:].astype(matmul_dtype)
        k2_s[...] = pkv_y[:, :a_pad].astype(matmul_dtype)
        v2_s[...] = pkv_y[:, a_pad:].astype(matmul_dtype)

    inv_sqrt_dk = 1.0 / math.sqrt(dk)

    x_t = mod1_qt_ref[0]                                # (TQ, D_pad) f32
    y_t = mod2_qt_ref[0]

    # q projections for this tile; fold 1/sqrt(dk) into q (O(TQ*A) not O(TQ*L)).
    q1_t = (jnp.dot(x_t.astype(matmul_dtype), wq_x_ref[...],
                    preferred_element_type=jnp.float32) * inv_sqrt_dk
            ).astype(matmul_dtype)
    q2_t = (jnp.dot(y_t.astype(matmul_dtype), wq_y_ref[...],
                    preferred_element_type=jnp.float32) * inv_sqrt_dk
            ).astype(matmul_dtype)

    # scores_mod1 = q_mod2 @ k_mod1^T, scores_mod2 = q_mod1 @ k_mod2^T
    # (contract last axes directly -> no explicit transpose of k).
    dn = (((1,), (1,)), ((), ()))
    s1 = lax.dot_general(q2_t, k1_s[...], dn, preferred_element_type=jnp.float32)
    s2 = lax.dot_general(q1_t, k2_s[...], dn, preferred_element_type=jnp.float32)

    # Mask out padded key positions (only compiled when L was padded).
    if l_pad != l_valid:
        kmask = lax.broadcasted_iota(jnp.int32, s1.shape, 1) < l_valid
        s1 = jnp.where(kmask, s1, -1e9)
        s2 = jnp.where(kmask, s2, -1e9)

    # TODO(synk): attention_mask (None in the reference call path) not supported.

    def _softmax(s):  # numerically stable, f32, EUP reciprocal
        p = jnp.exp(s - jnp.max(s, axis=-1, keepdims=True))
        return p * pl.reciprocal(jnp.sum(p, axis=-1, keepdims=True), approx=True)

    p1 = _softmax(s1).astype(matmul_dtype)
    p2 = _softmax(s2).astype(matmul_dtype)
    # TODO(synk): training-mode dropout on p1/p2 (identity in eval mode) omitted.

    o1 = jnp.dot(p1, v1_s[...], preferred_element_type=jnp.float32)  # (TQ, A_pad)
    o2 = jnp.dot(p2, v2_s[...], preferred_element_type=jnp.float32)

    if residual == 1:
        o1 = o1 + y_t
        o2 = o2 + x_t
    elif residual == 2:
        o1 = o1 + x_t
        o2 = o2 + y_t

    out1_ref[0] = o1.astype(out1_ref.dtype)
    out2_ref[0] = o2.astype(out2_ref.dtype)


def symmetric_attention(mod1, mod2, weights, *, residual=1,
                        matmul_dtype=jnp.bfloat16, max_q_tile=128):
    """mod1, mod2: (B, L, D) float32.
    weights: dict of 6 (D, A) matrices in (in, out) orientation
    (kx, qx, vx, ky, qy, vy). Returns (out1, out2), each (B, L, A) float32."""
    B, L, D = mod1.shape
    A = weights["kx"].shape[1]
    dk = D  # PyTorch module: self.dk = input_size
    if residual != 0:
        assert A == D, "residual add requires attention_size == input_size"

    D_pad = _round_up(D, 128)
    A_pad = _round_up(A, 128)
    TQ = min(max_q_tile, _round_up(L, 8))
    L_pad = _round_up(L, TQ)
    QT = L_pad // TQ

    def pad_seq(x):
        return jnp.pad(x, ((0, 0), (0, L_pad - L), (0, D_pad - D)))

    def pad_w(w):  # (D, A) -> (D_pad, A_pad), zero padded
        return jnp.pad(w, ((0, D_pad - D), (0, A_pad - A)))

    m1 = pad_seq(mod1)
    m2 = pad_seq(mod2)
    wkv_x = jnp.concatenate([pad_w(weights["kx"]), pad_w(weights["vx"])],
                            axis=1).astype(matmul_dtype)
    wkv_y = jnp.concatenate([pad_w(weights["ky"]), pad_w(weights["vy"])],
                            axis=1).astype(matmul_dtype)
    wq_x = pad_w(weights["qx"]).astype(matmul_dtype)
    wq_y = pad_w(weights["qy"]).astype(matmul_dtype)

    full_spec = pl.BlockSpec((1, L_pad, D_pad), lambda b, qi: (b, 0, 0))
    qt_spec = pl.BlockSpec((1, TQ, D_pad), lambda b, qi: (b, qi, 0))
    wkv_spec = pl.BlockSpec((D_pad, 2 * A_pad), lambda b, qi: (0, 0))
    wq_spec = pl.BlockSpec((D_pad, A_pad), lambda b, qi: (0, 0))
    out_spec = pl.BlockSpec((1, TQ, A_pad), lambda b, qi: (b, qi, 0))

    kernel = functools.partial(
        _symmetric_attention_kernel,
        dk=dk, residual=residual, a_pad=A_pad,
        l_valid=L, l_pad=L_pad, matmul_dtype=matmul_dtype)

    # Rough VMEM budget (double-buffered I/O + scratch + temporaries); cap at
    # 64 MiB so the same setting is valid on v7x's smaller physical VMEM.
    mm_isz = jnp.dtype(matmul_dtype).itemsize
    est = (2 * (2 * L_pad * D_pad * 4)            # mod1/mod2 full blocks
           + 2 * (2 * TQ * D_pad * 4)             # query-tile blocks
           + 2 * (6 * D_pad * A_pad * mm_isz)     # fused weights
           + 2 * (2 * TQ * A_pad * 4)             # output blocks
           + 4 * L_pad * A_pad * mm_isz           # k/v scratch
           + 2 * L_pad * 2 * A_pad * 4            # projection temporaries
           + 4 * TQ * L_pad * 4)                  # score/prob temporaries
    vmem_limit = int(min(64 * 2 ** 20, max(32 * 2 ** 20, 2 * est)))

    out1, out2 = pl.pallas_call(
        kernel,
        out_shape=(jax.ShapeDtypeStruct((B, L_pad, A_pad), jnp.float32),
                   jax.ShapeDtypeStruct((B, L_pad, A_pad), jnp.float32)),
        grid_spec=pltpu.PrefetchScalarGridSpec(
            num_scalar_prefetch=0,
            grid=(B, QT),
            in_specs=[full_spec, full_spec, qt_spec, qt_spec,
                      wkv_spec, wkv_spec, wq_spec, wq_spec],
            out_specs=[out_spec, out_spec],
            scratch_shapes=[pltpu.VMEM((L_pad, A_pad), matmul_dtype)] * 4,
        ),
        compiler_params=pltpu.CompilerParams(
            # query-tile axis is "arbitrary" because the k/v scratch cache is
            # carried across it; batch axis is megacore-parallel.
            dimension_semantics=("parallel", "arbitrary"),
            vmem_limit_bytes=vmem_limit,
        ),
    )(m1, m2, m1, m2, wkv_x, wkv_y, wq_x, wq_y)

    return out1[:, :L, :A], out2[:, :L, :A]


def _xavier_uniform(key, fan_out, fan_in):
    # Matches torch.nn.init.xavier_uniform_ for a (fan_out, fan_in) weight.
    bound = math.sqrt(6.0 / (fan_in + fan_out))
    w = jax.random.uniform(key, (fan_out, fan_in), jnp.float32, -bound, bound)
    return w.T  # store as (in, out) for the kernel


def _reference(mod1, mod2, weights, dk, residual=1):
    def lin(x, w):  # w is (in, out)
        return jnp.einsum("bld,da->bla", x, w)
    k1, q1, v1 = lin(mod1, weights["kx"]), lin(mod1, weights["qx"]), lin(mod1, weights["vx"])
    k2, q2, v2 = lin(mod2, weights["ky"]), lin(mod2, weights["qy"]), lin(mod2, weights["vy"])
    s1 = jnp.einsum("bla,bma->blm", q2, k1) / math.sqrt(dk)
    s2 = jnp.einsum("bla,bma->blm", q1, k2) / math.sqrt(dk)
    p1 = jax.nn.softmax(s1, axis=-1)
    p2 = jax.nn.softmax(s2, axis=-1)
    o1 = jnp.einsum("blm,bma->bla", p1, v1)
    o2 = jnp.einsum("blm,bma->bla", p2, v2)
    if residual == 1:
        o1, o2 = o1 + mod2, o2 + mod1
    elif residual == 2:
        o1, o2 = o1 + mod1, o2 + mod2
    return o1, o2


if __name__ == "__main__":
    B, L, D = 2, 12, 32          # attention_size = input_size = 32
    A = D

    key = jax.random.PRNGKey(0)
    keys = jax.random.split(key, 8)
    names = ["kx", "qx", "vx", "ky", "qy", "vy"]
    weights = {n: _xavier_uniform(k, A, D) for n, k in zip(names, keys[:6])}
    mod1 = jax.random.normal(keys[6], (B, L, D), jnp.float32)
    mod2 = jax.random.normal(keys[7], (B, L, D), jnp.float32)

    ref1, ref2 = _reference(mod1, mod2, weights, dk=D, residual=1)

    # bf16 MXU operands; small query tile to exercise the multi-tile grid,
    # k/v scratch caching and padded-key masking (L=12 -> L_pad=16).
    out1, out2 = symmetric_attention(mod1, mod2, weights, residual=1,
                                     matmul_dtype=jnp.bfloat16, max_q_tile=8)
    out1 = jax.block_until_ready(out1)
    out2 = jax.block_until_ready(out2)
    assert jnp.allclose(out1, ref1, atol=5e-2, rtol=5e-2)
    assert jnp.allclose(out2, ref2, atol=5e-2, rtol=5e-2)

    # f32 MXU operands, single query tile (tighter numerics).
    out1f, out2f = symmetric_attention(mod1, mod2, weights, residual=1,
                                       matmul_dtype=jnp.float32)
    out1f = jax.block_until_ready(out1f)
    out2f = jax.block_until_ready(out2f)
    assert jnp.allclose(out1f, ref1, atol=1e-2, rtol=1e-2)
    assert jnp.allclose(out2f, ref2, atol=1e-2, rtol=1e-2)

    print("KERNEL_OK")
</pallas_src>

<mosaic_0001>
module attributes {stable_mosaic.version = 11 : i64} {
  func.func @_symmetric_attention_kernel(%arg0: i32, %arg1: i32, %arg2: memref<1x16x128xf32, #tpu.memory_space<vmem>>, %arg3: memref<1x16x128xf32, #tpu.memory_space<vmem>>, %arg4: memref<1x8x128xf32, #tpu.memory_space<vmem>>, %arg5: memref<1x8x128xf32, #tpu.memory_space<vmem>>, %arg6: memref<128x256xbf16, #tpu.memory_space<vmem>>, %arg7: memref<128x256xbf16, #tpu.memory_space<vmem>>, %arg8: memref<128x128xbf16, #tpu.memory_space<vmem>>, %arg9: memref<128x128xbf16, #tpu.memory_space<vmem>>, %arg10: memref<1x8x128xf32, #tpu.memory_space<vmem>>, %arg11: memref<1x8x128xf32, #tpu.memory_space<vmem>>, %arg12: memref<16x128xbf16, #tpu.memory_space<vmem>>, %arg13: memref<16x128xbf16, #tpu.memory_space<vmem>>, %arg14: memref<16x128xbf16, #tpu.memory_space<vmem>>, %arg15: memref<16x128xbf16, #tpu.memory_space<vmem>>) attributes {dimension_semantics = [#tpu.dimension_semantics<parallel>, #tpu.dimension_semantics<arbitrary>], iteration_bounds = array<i64: 2, 2>, scalar_prefetch = 0 : i64, scratch_operands = 4 : i64, tpu.core_type = #tpu.core_type<tc>, window_params = [{transform_indices = @transform_0, window_bounds = array<i64: 1, 16, 128>}, {transform_indices = @transform_1, window_bounds = array<i64: 1, 16, 128>}, {transform_indices = @transform_2, window_bounds = array<i64: 1, 8, 128>}, {transform_indices = @transform_3, window_bounds = array<i64: 1, 8, 128>}, {pipeline_mode = #tpu.pipeline_mode<synchronous>, transform_indices = @transform_4, window_bounds = array<i64: 128, 256>}, {pipeline_mode = #tpu.pipeline_mode<synchronous>, transform_indices = @transform_5, window_bounds = array<i64: 128, 256>}, {pipeline_mode = #tpu.pipeline_mode<synchronous>, transform_indices = @transform_6, window_bounds = array<i64: 128, 128>}, {pipeline_mode = #tpu.pipeline_mode<synchronous>, transform_indices = @transform_7, window_bounds = array<i64: 128, 128>}, {transform_indices = @transform_8, window_bounds = array<i64: 1, 8, 128>}, {transform_indices = @transform_9, window_bounds = array<i64: 1, 8, 128>}]} {
    %c0_i32 = arith.constant 0 : i32
    %0 = arith.cmpi eq, %arg1, %c0_i32 : i32
    %1 = arith.extui %0 : i1 to i32
    %c0_i32_0 = arith.constant 0 : i32
    %2 = arith.cmpi ne, %1, %c0_i32_0 : i32
    scf.if %2 {
      %c0_37 = arith.constant 0 : index
      %c0_38 = arith.constant 0 : index
      %c0_39 = arith.constant 0 : index
      %64 = vector.load %arg2[%c0_37, %c0_38, %c0_39] : memref<1x16x128xf32, #tpu.memory_space<vmem>>, vector<1x16x128xf32>
      %65 = vector.shape_cast %64 : vector<1x16x128xf32> to vector<16x128xf32>
      %66 = arith.truncf %65 : vector<16x128xf32> to vector<16x128xbf16>
      %c0_40 = arith.constant 0 : index
      %c0_41 = arith.constant 0 : index
      %c0_42 = arith.constant 0 : index
      %67 = vector.load %arg3[%c0_40, %c0_41, %c0_42] : memref<1x16x128xf32, #tpu.memory_space<vmem>>, vector<1x16x128xf32>
      %68 = vector.shape_cast %67 : vector<1x16x128xf32> to vector<16x128xf32>
      %69 = arith.truncf %68 : vector<16x128xf32> to vector<16x128xbf16>
      %c0_43 = arith.constant 0 : index
      %c0_44 = arith.constant 0 : index
      %70 = vector.load %arg6[%c0_43, %c0_44] : memref<128x256xbf16, #tpu.memory_space<vmem>>, vector<128x256xbf16>
      %cst_45 = arith.constant dense<0.000000e+00> : vector<16x256xf32>
      %71 = tpu.matmul %66, %70, %cst_45 {dimension_numbers = #tpu.dot_dimension_numbers<[1], [0], [0], [1], [0, 0, 1, 1], [], []>} : vector<16x128xbf16>, vector<128x256xbf16>, vector<16x256xf32> -> vector<16x256xf32>
      %c0_46 = arith.constant 0 : index
      %c0_47 = arith.constant 0 : index
      %72 = vector.load %arg7[%c0_46, %c0_47] : memref<128x256xbf16, #tpu.memory_space<vmem>>, vector<128x256xbf16>
      %cst_48 = arith.constant dense<0.000000e+00> : vector<16x256xf32>
      %73 = tpu.matmul %69, %72, %cst_48 {dimension_numbers = #tpu.dot_dimension_numbers<[1], [0], [0], [1], [0, 0, 1, 1], [], []>} : vector<16x128xbf16>, vector<128x256xbf16>, vector<16x256xf32> -> vector<16x256xf32>
      %74 = vector.extract_strided_slice %71 {offsets = [0, 0], sizes = [16, 128], strides = [1, 1]} : vector<16x256xf32> to vector<16x128xf32>
      %75 = arith.truncf %74 : vector<16x128xf32> to vector<16x128xbf16>
      %c0_49 = arith.constant 0 : index
      %c0_50 = arith.constant 0 : index
      %76 = vector.load %arg12[%c0_49, %c0_50] : memref<16x128xbf16, #tpu.memory_space<vmem>>, vector<16x128xbf16>
      tpu.vector_store %arg12[%c0_49, %c0_50], %75 {strides = array<i32>} : memref<16x128xbf16, #tpu.memory_space<vmem>>, vector<16x128xbf16>,
      %77 = vector.extract_strided_slice %71 {offsets = [0, 128], sizes = [16, 128], strides = [1, 1]} : vector<16x256xf32> to vector<16x128xf32>
      %78 = arith.truncf %77 : vector<16x128xf32> to vector<16x128xbf16>
      %c0_51 = arith.constant 0 : index
      %c0_52 = arith.constant 0 : index
      %79 = vector.load %arg13[%c0_51, %c0_52] : memref<16x128xbf16, #tpu.memory_space<vmem>>, vector<16x128xbf16>
      tpu.vector_store %arg13[%c0_51, %c0_52], %78 {strides = array<i32>} : memref<16x128xbf16, #tpu.memory_space<vmem>>, vector<16x128xbf16>,
      %80 = vector.extract_strided_slice %73 {offsets = [0, 0], sizes = [16, 128], strides = [1, 1]} : vector<16x256xf32> to vector<16x128xf32>
      %81 = arith.truncf %80 : vector<16x128xf32> to vector<16x128xbf16>
      %c0_53 = arith.constant 0 : index
      %c0_54 = arith.constant 0 : index
      %82 = vector.load %arg14[%c0_53, %c0_54] : memref<16x128xbf16, #tpu.memory_space<vmem>>, vector<16x128xbf16>
      tpu.vector_store %arg14[%c0_53, %c0_54], %81 {strides = array<i32>} : memref<16x128xbf16, #tpu.memory_space<vmem>>, vector<16x128xbf16>,
      %83 = vector.extract_strided_slice %73 {offsets = [0, 128], sizes = [16, 128], strides = [1, 1]} : vector<16x256xf32> to vector<16x128xf32>
      %84 = arith.truncf %83 : vector<16x128xf32> to vector<16x128xbf16>
      %c0_55 = arith.constant 0 : index
      %c0_56 = arith.constant 0 : index
      %85 = vector.load %arg15[%c0_55, %c0_56] : memref<16x128xbf16, #tpu.memory_space<vmem>>, vector<16x128xbf16>
      tpu.vector_store %arg15[%c0_55, %c0_56], %84 {strides = array<i32>} : memref<16x128xbf16, #tpu.memory_space<vmem>>, vector<16x128xbf16>,
    } else {
    }
    %c0 = arith.constant 0 : index
    %c0_1 = arith.constant 0 : index
    %c0_2 = arith.constant 0 : index
    %3 = vector.load %arg4[%c0, %c0_1, %c0_2] : memref<1x8x128xf32, #tpu.memory_space<vmem>>, vector<1x8x128xf32>
    %4 = vector.shape_cast %3 : vector<1x8x128xf32> to vector<8x128xf32>
    %c0_3 = arith.constant 0 : index
    %c0_4 = arith.constant 0 : index
    %c0_5 = arith.constant 0 : index
    %5 = vector.load %arg5[%c0_3, %c0_4, %c0_5] : memref<1x8x128xf32, #tpu.memory_space<vmem>>, vector<1x8x128xf32>
    %6 = vector.shape_cast %5 : vector<1x8x128xf32> to vector<8x128xf32>
    %7 = arith.truncf %4 : vector<8x128xf32> to vector<8x128xbf16>
    %c0_6 = arith.constant 0 : index
    %c0_7 = arith.constant 0 : index
    %8 = vector.load %arg8[%c0_6, %c0_7] : memref<128x128xbf16, #tpu.memory_space<vmem>>, vector<128x128xbf16>
    %cst = arith.constant dense<0.000000e+00> : vector<8x128xf32>
    %9 = tpu.matmul %7, %8, %cst {dimension_numbers = #tpu.dot_dimension_numbers<[1], [0], [0], [1], [0, 0, 1, 1], [], []>} : vector<8x128xbf16>, vector<128x128xbf16>, vector<8x128xf32> -> vector<8x128xf32>
    %cst_8 = arith.constant 0.176776692 : f32
    %10 = vector.broadcast %cst_8 : f32 to vector<8x128xf32>
    %11 = arith.mulf %9, %10 : vector<8x128xf32>
    %12 = arith.truncf %11 : vector<8x128xf32> to vector<8x128xbf16>
    %13 = arith.truncf %6 : vector<8x128xf32> to vector<8x128xbf16>
    %c0_9 = arith.constant 0 : index
    %c0_10 = arith.constant 0 : index
    %14 = vector.load %arg9[%c0_9, %c0_10] : memref<128x128xbf16, #tpu.memory_space<vmem>>, vector<128x128xbf16>
    %cst_11 = arith.constant dense<0.000000e+00> : vector<8x128xf32>
    %15 = tpu.matmul %13, %14, %cst_11 {dimension_numbers = #tpu.dot_dimension_numbers<[1], [0], [0], [1], [0, 0, 1, 1], [], []>} : vector<8x128xbf16>, vector<128x128xbf16>, vector<8x128xf32> -> vector<8x128xf32>
    %cst_12 = arith.constant 0.176776692 : f32
    %16 = vector.broadcast %cst_12 : f32 to vector<8x128xf32>
    %17 = arith.mulf %15, %16 : vector<8x128xf32>
    %18 = arith.truncf %17 : vector<8x128xf32> to vector<8x128xbf16>
    %c0_13 = arith.constant 0 : index
    %c0_14 = arith.constant 0 : index
    %19 = vector.load %arg12[%c0_13, %c0_14] : memref<16x128xbf16, #tpu.memory_space<vmem>>, vector<16x128xbf16>
    %cst_15 = arith.constant dense<0.000000e+00> : vector<8x16xf32>
    %20 = tpu.matmul %18, %19, %cst_15 {dimension_numbers = #tpu.dot_dimension_numbers<[1], [1], [0], [0], [0, 0, 1, 0], [], []>} : vector<8x128xbf16>, vector<16x128xbf16>, vector<8x16xf32> -> vector<8x16xf32>
    %c0_16 = arith.constant 0 : index
    %c0_17 = arith.constant 0 : index
    %21 = vector.load %arg14[%c0_16, %c0_17] : memref<16x128xbf16, #tpu.memory_space<vmem>>, vector<16x128xbf16>
    %cst_18 = arith.constant dense<0.000000e+00> : vector<8x16xf32>
    %22 = tpu.matmul %12, %21, %cst_18 {dimension_numbers = #tpu.dot_dimension_numbers<[1], [1], [0], [0], [0, 0, 1, 0], [], []>} : vector<8x128xbf16>, vector<16x128xbf16>, vector<8x16xf32> -> vector<8x16xf32>
    %23 = tpu.iota {dimensions = array<i32: 1>} : vector<8x16xi32>
    %c12_i32 = arith.constant 12 : i32
    %24 = vector.broadcast %c12_i32 : i32 to vector<8x16xi32>
    %25 = arith.cmpi slt, %23, %24 : vector<8x16xi32>
    %cst_19 = arith.constant -1.000000e+09 : f32
    %26 = vector.broadcast %cst_19 : f32 to vector<8x16xf32>
    %27 = arith.select %25, %20, %26 : vector<8x16xi1>, vector<8x16xf32>
    %cst_20 = arith.constant -1.000000e+09 : f32
    %28 = vector.broadcast %cst_20 : f32 to vector<8x16xf32>
    %29 = arith.select %25, %22, %28 : vector<8x16xi1>, vector<8x16xf32>
    %cst_21 = arith.constant dense<0xFF800000> : vector<8xf32>
    %30 = vector.multi_reduction <maximumf>, %27, %cst_21 [1] : vector<8x16xf32> to vector<8xf32>
    %31 = vector.shape_cast %30 : vector<8xf32> to vector<8x1xf32>
    %32 = vector.broadcast %31 : vector<8x1xf32> to vector<8x16xf32>
    %33 = arith.subf %27, %32 : vector<8x16xf32>
    %34 = math.exp %33 : vector<8x16xf32>
    %cst_22 = arith.constant dense<0.000000e+00> : vector<8xf32>
    %35 = vector.multi_reduction <add>, %34, %cst_22 [1] : vector<8x16xf32> to vector<8xf32>
    %36 = vector.shape_cast %35 : vector<8xf32> to vector<8x1xf32>
    %37 = tpu.reciprocal %36 {approx = true} : vector<8x1xf32> -> vector<8x1xf32>
    %38 = vector.broadcast %37 : vector<8x1xf32> to vector<8x16xf32>
    %39 = arith.mulf %34, %38 : vector<8x16xf32>
    %40 = arith.truncf %39 : vector<8x16xf32> to vector<8x16xbf16>
    %cst_23 = arith.constant dense<0xFF800000> : vector<8xf32>
    %41 = vector.multi_reduction <maximumf>, %29, %cst_23 [1] : vector<8x16xf32> to vector<8xf32>
    %42 = vector.shape_cast %41 : vector<8xf32> to vector<8x1xf32>
    %43 = vector.broadcast %42 : vector<8x1xf32> to vector<8x16xf32>
    %44 = arith.subf %29, %43 : vector<8x16xf32>
    %45 = math.exp %44 : vector<8x16xf32>
    %cst_24 = arith.constant dense<0.000000e+00> : vector<8xf32>
    %46 = vector.multi_reduction <add>, %45, %cst_24 [1] : vector<8x16xf32> to vector<8xf32>
    %47 = vector.shape_cast %46 : vector<8xf32> to vector<8x1xf32>
    %48 = tpu.reciprocal %47 {approx = true} : vector<8x1xf32> -> vector<8x1xf32>
    %49 = vector.broadcast %48 : vector<8x1xf32> to vector<8x16xf32>
    %50 = arith.mulf %45, %49 : vector<8x16xf32>
    %51 = arith.truncf %50 : vector<8x16xf32> to vector<8x16xbf16>
    %c0_25 = arith.constant 0 : index
    %c0_26 = arith.constant 0 : index
    %52 = vector.load %arg13[%c0_25, %c0_26] : memref<16x128xbf16, #tpu.memory_space<vmem>>, vector<16x128xbf16>
    %cst_27 = arith.constant dense<0.000000e+00> : vector<8x128xf32>
    %53 = tpu.matmul %40, %52, %cst_27 {dimension_numbers = #tpu.dot_dimension_numbers<[1], [0], [0], [1], [0, 0, 1, 1], [], []>} : vector<8x16xbf16>, vector<16x128xbf16>, vector<8x128xf32> -> vector<8x128xf32>
    %c0_28 = arith.constant 0 : index
    %c0_29 = arith.constant 0 : index
    %54 = vector.load %arg15[%c0_28, %c0_29] : memref<16x128xbf16, #tpu.memory_space<vmem>>, vector<16x128xbf16>
    %cst_30 = arith.constant dense<0.000000e+00> : vector<8x128xf32>
    %55 = tpu.matmul %51, %54, %cst_30 {dimension_numbers = #tpu.dot_dimension_numbers<[1], [0], [0], [1], [0, 0, 1, 1], [], []>} : vector<8x16xbf16>, vector<16x128xbf16>, vector<8x128xf32> -> vector<8x128xf32>
    %56 = arith.addf %53, %6 : vector<8x128xf32>
    %57 = arith.addf %55, %4 : vector<8x128xf32>
    %c0_31 = arith.constant 0 : index
    %c0_32 = arith.constant 0 : index
    %c0_33 = arith.constant 0 : index
    %58 = vector.load %arg10[%c0_31, %c0_32, %c0_33] : memref<1x8x128xf32, #tpu.memory_space<vmem>>, vector<1x8x128xf32>
    %59 = vector.shape_cast %58 : vector<1x8x128xf32> to vector<8x128xf32>
    %60 = vector.shape_cast %56 : vector<8x128xf32> to vector<1x8x128xf32>
    tpu.vector_store %arg10[%c0_31, %c0_32, %c0_33], %60 {strides = array<i32>} : memref<1x8x128xf32, #tpu.memory_space<vmem>>, vector<1x8x128xf32>,
    %c0_34 = arith.constant 0 : index
    %c0_35 = arith.constant 0 : index
    %c0_36 = arith.constant 0 : index
    %61 = vector.load %arg11[%c0_34, %c0_35, %c0_36] : memref<1x8x128xf32, #tpu.memory_space<vmem>>, vector<1x8x128xf32>
    %62 = vector.shape_cast %61 : vector<1x8x128xf32> to vector<8x128xf32>
    %63 = vector.shape_cast %57 : vector<8x128xf32> to vector<1x8x128xf32>
    tpu.vector_store %arg11[%c0_34, %c0_35, %c0_36], %63 {strides = array<i32>} : memref<1x8x128xf32, #tpu.memory_space<vmem>>, vector<1x8x128xf32>,
    return
  }
  func.func @transform_0(%arg0: i32, %arg1: i32) -> (i32, i32, i32) {
    %c0_i32 = arith.constant 0 : i32
    %c0_i32_0 = arith.constant 0 : i32
    %c0_i32_1 = arith.constant 0 : i32
    return %arg0, %c0_i32, %c0_i32_0 : i32, i32, i32
  }
  func.func @transform_1(%arg0: i32, %arg1: i32) -> (i32, i32, i32) {
    %c0_i32 = arith.constant 0 : i32
    %c0_i32_0 = arith.constant 0 : i32
    %c0_i32_1 = arith.constant 0 : i32
    return %arg0, %c0_i32, %c0_i32_0 : i32, i32, i32
  }
  func.func @transform_2(%arg0: i32, %arg1: i32) -> (i32, i32, i32) {
    %c0_i32 = arith.constant 0 : i32
    %c0_i32_0 = arith.constant 0 : i32
    return %arg0, %arg1, %c0_i32 : i32, i32, i32
  }
  func.func @transform_3(%arg0: i32, %arg1: i32) -> (i32, i32, i32) {
    %c0_i32 = arith.constant 0 : i32
    %c0_i32_0 = arith.constant 0 : i32
    return %arg0, %arg1, %c0_i32 : i32, i32, i32
  }
  func.func @transform_4(%arg0: i32, %arg1: i32) -> (i32, i32) {
    %c0_i32 = arith.constant 0 : i32
    %c0_i32_0 = arith.constant 0 : i32
    %c0_i32_1 = arith.constant 0 : i32
    return %c0_i32, %c0_i32_0 : i32, i32
  }
  func.func @transform_5(%arg0: i32, %arg1: i32) -> (i32, i32) {
    %c0_i32 = arith.constant 0 : i32
    %c0_i32_0 = arith.constant 0 : i32
    %c0_i32_1 = arith.constant 0 : i32
    return %c0_i32, %c0_i32_0 : i32, i32
  }
  func.func @transform_6(%arg0: i32, %arg1: i32) -> (i32, i32) {
    %c0_i32 = arith.constant 0 : i32
    %c0_i32_0 = arith.constant 0 : i32
    %c0_i32_1 = arith.constant 0 : i32
    return %c0_i32, %c0_i32_0 : i32, i32
  }
  func.func @transform_7(%arg0: i32, %arg1: i32) -> (i32, i32) {
    %c0_i32 = arith.constant 0 : i32
    %c0_i32_0 = arith.constant 0 : i32
    %c0_i32_1 = arith.constant 0 : i32
    return %c0_i32, %c0_i32_0 : i32, i32
  }
  func.func @transform_8(%arg0: i32, %arg1: i32) -> (i32, i32, i32) {
    %c0_i32 = arith.constant 0 : i32
    %c0_i32_0 = arith.constant 0 : i32
    return %arg0, %arg1, %c0_i32 : i32, i32, i32
  }
  func.func @transform_9(%arg0: i32, %arg1: i32) -> (i32, i32, i32) {
    %c0_i32 = arith.constant 0 : i32
    %c0_i32_0 = arith.constant 0 : i32
    return %arg0, %arg1, %c0_i32 : i32, i32, i32
  }
}

</mosaic_0001>

<bundles_post_ra>
// kernel: tpu_custom_call.1
= control target key start
LH: loop header
LB: loop body
LE: loop exit
PB: predicated region body
PF: predicated region fallthrough
CT: control target
= control target key end

     0   :  { %s3055_s0 = inlined_call_operand.hbm [shape: f32[2,16,128], index: 0, kind: input, shape index: {}]   ;;  %s3056_s1 = inlined_call_operand.hbm [shape: f32[2,16,128], index: 1, kind: input, shape index: {}]   ;;  %s3057_s2 = inlined_call_operand.hbm [shape: f32[2,16,128], index: 2, kind: input, shape index: {}]   ;;  %s3058_s3 = inlined_call_operand.hbm [shape: f32[2,16,128], index: 3, kind: input, shape index: {}]   ;;  %s3059_s4 = inlined_call_operand.hbm [shape: bf16[128,256], index: 4, kind: input, shape index: {}]   ;;  %s3060_s5 = inlined_call_operand.hbm [shape: bf16[128,256], index: 5, kind: input, shape index: {}]   ;;  %s3061_s6 = inlined_call_operand.hbm [shape: bf16[128,128], index: 6, kind: input, shape index: {}]   ;;  %s3062_s7 = inlined_call_operand.hbm [shape: bf16[128,128], index: 7, kind: input, shape index: {}]   ;;  %s3063_s8 = inlined_call_operand.hbm [shape: f32[2,16,128], index: 8, kind: output, shape index: {0}]   ;;  %s3064_s9 = inlined_call_operand.hbm [shape: f32[2,16,128], index: 9, kind: output, shape index: {1}]  }
   0x1   :  { %3095 = sst [smem:[#allocation39_spill]] %s3055_s0 }
   0x2   :  { %3096 = sst [smem:[#allocation40_spill]] %s3056_s1 }
   0x3   :  { %3097 = sst [smem:[#allocation41_spill]] %s3057_s2 }
   0x4   :  { %3098 = sst [smem:[#allocation42_spill]] %s3058_s3 }
   0x5   :  { %3099 = sst [smem:[#allocation43_spill]] %s3059_s4 }
   0x6   :  { %3100 = sst [smem:[#allocation44_spill]] %s3060_s5 }
   0x7   :  { %3101 = sst [smem:[#allocation45_spill]] %s3061_s6 }
   0x8   :  { %3102 = sst [smem:[#allocation46_spill]] %s3062_s7 }
   0x9   :  { %3103 = sst [smem:[#allocation47_spill]] %s3063_s8 }
   0xa   :  { %3104 = sst [smem:[#allocation48_spill]] %s3064_s9 }
   0xb   :  { %15 = vsyncpa [#allocation7], 0 }
   0xc   :  { %17 = vsyncpa [#allocation7 + $0x1], 0 }
   0xd   :  { %18 = vsyncpa [#allocation10], 0 }
   0xe   :  { %20 = vsyncpa [#allocation10 + $0x1], 0 }
   0xf   :  { %21 = vsyncpa [#allocation13], 0 }
  0x10   :  { %23 = vsyncpa [#allocation13 + $0x1], 0 }
  0x11   :  { %24 = vsyncpa [#allocation16], 0 }
  0x12   :  { %25 = vsyncpa [#allocation19], 0 }
  0x13   :  { %26 = vsyncpa [#allocation8], 0 }
  0x14   :  { %28 = vsyncpa [#allocation8 + $0x1], 0 }
  0x15   :  { %29 = vsyncpa [#allocation22], 0 }
  0x16   :  { %31 = vsyncpa [#allocation22 + $0x1], 0  ;;  %s2434_s30 = smov 0   ;;  %s2436_s10 = smov 0  }
  0x17   :  { %s2438_s11 = smov 0   ;;  %s2440_s12 = smov 0  }
  0x18   :  { %s2442_s13 = smov 0   ;;  %s2444_s14 = smov 0  }
  0x19   :  { %s2446_s15 = smov 0   ;;  %s2448_s16 = smov 0  }
  0x1a   :  { %s2450_s17 = smov 0   ;;  %s2452_s18 = smov 0  }
  0x1b   :  { %s2454_s19 = smov 0  }
  0x1c LB: > { %3105 = sst [smem:[#allocation32_spill]] %s2341_s13  ;;  %s2490_s20 = sadd.s32 4294967295, %s2365_s19   ;;  %s2365_s19 = sphi %s2454_s19, %s37_s19   ;;  %s2361_s18 = sphi %s2452_s18, %s3174_s18   ;;  %s2357_s17 = sphi %s2450_s17, %s3173_s17   ;;  %s2353_s16 = sphi %s2448_s16, %s3172_s16   ;;  %s2349_s15 = sphi %s2446_s15, %s3171_s15   ;;  %s2345_s14 = sphi %s2444_s14, %s3170_s14   ;;  %s2341_s13 = sphi %s2442_s13, %s3169_s13   ;;  %s2337_s12 = sphi %s2440_s12, %s3164_s12   ;;  %s2333_s11 = sphi %s2438_s11, %s3168_s11   ;;  %s2329_s10 = sphi %s2436_s10, %s3167_s10   ;;  %s2325_s30 = sphi %s2434_s30, %s3166_s30  }
  0x1d   : > { %3106 = sst [smem:[#allocation33_spill]] %s2349_s15  ;;  %p1533_p0 = scmp.ge.s32.totalorder %s2365_s19, 1 }
  0x1e   : > { %3107 = sst [smem:[#allocation34_spill]] %s2353_s16  ;;  %p3067_p1 = scmp.eq.s32.totalorder %s2490_s20, 0 }
  0x1f   : > { %p302_p2 = scmp.lt.s32.totalorder %s2365_s19, 5  ;;  %s2367_s22 = smov [#allocation14]  }
  0x20   : > { %s314_s23 = sshll.u32 %s2367_s22, 4  ;;  %s2368_s25 = smov [#allocation15]   ;;  %s315_s23 = int_to_ptr.vmem [resolvable:$true] %s314_s23 }
  0x21   : > { %p2495_p3 = pnand %p1533_p0, %p302_p2  ;;  %s327_s26 = sshll.u32 %s2368_s25, 4  ;;  %s2507_s26 = int_to_ptr.vmem [resolvable:$true] %s327_s26 }
  0x22   : > { %s3111_s4 = sld [smem:[#allocation43_spill]] }
  0x23   : > { %s3108_s21 = scalar_select %p2495_p3, 1, 0 }
  0x24   : > { %p1741_p4 = pneg %p2495_p3 }
  0x25   : > { %3109 = sst [smem:[#allocation35_spill]] %s3108_s21 }
  0x26   : > { %p2503_p5 = pnand %p1741_p4, %p3067_p1 }
  0x28   : > { %s3110_s24 = scalar_select %p2503_p5, 1, 0 }
  0x29   : > { %s1955_s29 = scalar_lea.hbm %s3111_s4, 2048  ;;  %p2517_p7 = pneg %p2503_p5 }
  0x2a   : > { %p1956_p6 = scmp.ne.s32.totalorder %s3111_s4, %s1955_s29  ;;  %p1962_p10 = scmp.lt.u32.totalorder %s1955_s29, %s3111_s4 }
  0x2c   : > { %p1958_p8 = pnand %p2517_p7, %p1956_p6 }
  0x2e   : > { %p1959_p9 = pneg %p1958_p8 }
  0x30   : > { %p1964_p11 = pnand %p1962_p10, %p1959_p9 }
  0x32   : > { %1967 = shalt.err (!%p1964_p11)
}
  0x33   : > { %s1968_s27 = scalar_lea.vmem %s315_s23, 2048  ;;  %p1976_p2 = scmp.lt.s32.totalorder %s315_s23, %s315_s23 }
  0x34   : > { %p1969_p12 = scmp.ne.s32.totalorder %s315_s23, %s1968_s27  ;;  %p1977_p4 = scmp.lt.s32.totalorder %s1968_s27, %s1968_s27 }
  0x36   : > { %p1971_p13 = pnand %p1969_p12, %p2517_p7  ;;  %p1978_p1 = por %p1977_p4, %p1976_p2 }
  0x38   : > { %p1972_p0 = pneg %p1971_p13 }
  0x3a   : > { %p1979_p3 = pnand %p1978_p1, %p1972_p0 }
  0x3c   : > { %1982 = shalt.err (!%p1979_p3)
}
  0x3d   : > { %s3073_s8 = smov 128   ;;  %s3075_s9 = smov 8  }
  0x3e   : > { %1744 = dma.hbm_to_vmem [thread:$0]  (!%p2503_p5), %s3111_s4, 2048, %s315_s23, [#allocation13], %s3073_s8, %s3073_s8, %s3075_s9  }
  0x3f   : > { %s3113_s5 = sld [smem:[#allocation44_spill]] }
  0x45   : > { %s1983_s15 = scalar_lea.hbm %s3113_s5, 2048 }
  0x46   : > { %p1984_p1 = scmp.ne.s32.totalorder %s3113_s5, %s1983_s15  ;;  %p1990_p8 = scmp.lt.u32.totalorder %s1983_s15, %s3113_s5 }
  0x48   : > { %p1986_p3 = pnand %p1984_p1, %p2517_p7 }
  0x4a   : > { %p1987_p6 = pneg %p1986_p3 }
  0x4c   : > { %p1992_p9 = pnand %p1990_p8, %p1987_p6 }
  0x4e   : > { %1995 = shalt.err (!%p1992_p9)
}
  0x4f   : > { %s1996_s23 = scalar_lea.vmem %s2507_s26, 2048  ;;  %p2004_p13 = scmp.lt.s32.totalorder %s2507_s26, %s2507_s26 }
  0x50   : > { %p1997_p10 = scmp.ne.s32.totalorder %s2507_s26, %s1996_s23  ;;  %p2005_p0 = scmp.lt.s32.totalorder %s1996_s23, %s1996_s23 }
  0x52   : > { %p1999_p11 = pnand %p1997_p10, %p2517_p7  ;;  %p2006_p2 = por %p2005_p0, %p2004_p13 }
  0x54   : > { %p2000_p12 = pneg %p1999_p11 }
  0x56   : > { %p2007_p4 = pnand %p2006_p2, %p2000_p12 }
  0x58   : > { %2010 = shalt.err (!%p2007_p4)
}
  0x59   : > { %1747 = dma.hbm_to_vmem [thread:$0]  (!%p2503_p5), %s3113_s5, 2048, %s2507_s26, [#allocation16], %s3073_s8, %s3073_s8, %s3075_s9  }
  0x5a   : > { %p63_p1 = scmp.ne.s32.totalorder %s2345_s14, %s2341_s13  ;;  %p3079_p3 = scmp.eq.s32.totalorder %s2365_s19, 0 }
  0x5b   : > { %p69_p6 = scmp.ne.s32.totalorder %s2341_s13, %s2337_s12  ;;  %p3078_p8 = scmp.lt.s32.totalorder %s2365_s19, 4 }
  0x5c   : > { %s3072_s21 = sand.u32 1, %s2345_s14   ;;  %p65_p9 = por %p3079_p3, %p63_p1 }
  0x5d   : > { %p3114_p10 = scmp.eq.s32.totalorder %s2490_s20, 0  ;;  %s2580_s28 = sshll.u32 %s3072_s21, 4 }
  0x5e   : > { %s3077_s29 = sshll.u32 %s2361_s18, 8  ;;  %p2585_p12 = pnand %p3078_p8, %p65_p9 }
  0x5f   : > { %p2574_p11 = por %p3114_p10, %p69_p6  ;;  %s3083_s12 = sand.u32 1, %s2365_s19  }
  0x60   : > { %s3117_s26 = scalar_select %p2585_p12, 1, 0 }
  0x61   : > { %s3115_s16 = scalar_select %p2574_p11, 1, 0 }
  0x62   : > { %s3118_s1 = sld [smem:[#allocation40_spill]]  ;;  %s392_s2 = scalar_lea.vmem [#allocation9], %s2580_s28 }
  0x63   : > { %3116 = sst [smem:[#allocation36_spill]] %s3115_s16  ;;  %s399_s3 = sshll.u32 %s392_s2, 4  ;;  %s2598_s3 = int_to_ptr.vmem [resolvable:$true] %s399_s3 }
  0x64   : > { %s2371_s15 = smov [#allocation17]   ;;  %s2604_s8 = scalar_lea.sflag [#allocation10], %s3083_s12 }
  0x65   : > { %s2600_s21 = sshll.u32 %s2371_s15, 4  ;;  %3119 = sst [smem:[#allocation37_spill]] %s2604_s8  ;;  %s341_s21 = int_to_ptr.vmem [resolvable:$true] %s2600_s21 }
  0x66   : > { %p3084_p0 = pneg %p2585_p12 }
  0x68   : > { %s2595_s23 = scalar_lea.hbm %s3118_s1, %s3077_s29  ;;  %s2016_s2 = scalar_lea.hbm %s3118_s1, 512 }
  0x69   : > { %s2011_s9 = scalar_lea.hbm %s2595_s23, 256  ;;  %p2017_p1 = scmp.lt.u32.totalorder %s2595_s23, %s3118_s1 }
  0x6a   : > { %p2012_p13 = scmp.ne.s32.totalorder %s2595_s23, %s2011_s9  ;;  %p2018_p6 = scmp.lt.u32.totalorder %s2016_s2, %s2011_s9 }
  0x6b   : > { %p2020_p10 = scmp.lt.u32.totalorder %s2011_s9, %s2595_s23 }
  0x6c   : > { %p2014_p2 = pnand %p3084_p0, %p2012_p13  ;;  %p2019_p9 = por %p2018_p6, %p2017_p1 }
  0x6e   : > { %p2015_p4 = pneg %p2014_p2  ;;  %p2021_p8 = por %p2020_p10, %p2019_p9 }
  0x70   : > { %p2022_p3 = pnand %p2021_p8, %p2015_p4 }
  0x72   : > { %2025 = shalt.err (!%p2022_p3)
}
  0x73   : > { %s2026_s15 = scalar_lea.vmem %s2598_s3, 256  ;;  %s2372_s25 = smov [#allocation9]  }
  0x74   : > { %p2027_p13 = scmp.ne.s32.totalorder %s2598_s3, %s2026_s15  ;;  %s2031_s27 = sshll.u32 %s2372_s25, 4  ;;  %s2032_s27 = int_to_ptr.vmem [resolvable:$false] %s2031_s27 }
  0x75   : > { %s2033_s4 = scalar_lea.vmem %s2032_s27, 512  ;;  %p2034_p5 = scmp.lt.s32.totalorder %s2598_s3, %s2032_s27 }
  0x76   : > { %p2029_p2 = pnand %p2027_p13, %p3084_p0  ;;  %p2035_p1 = scmp.lt.s32.totalorder %s2033_s4, %s2026_s15 }
  0x78   : > { %p2030_p11 = pneg %p2029_p2  ;;  %p2036_p6 = por %p2035_p1, %p2034_p5 }
  0x7a   : > { %p2037_p9 = pnand %p2036_p6, %p2030_p11 }
  0x7c   : > { %2040 = shalt.err (!%p2037_p9)
}
  0x7d   : > { %s3120_s9 = smov 8   ;;  %s3121_s29 = smov 128  }
  0x7e   : > { %1760 = dma.hbm_to_vmem [thread:$0]  (!%p2585_p12), %s2595_s23, 256, %s2598_s3, %s2604_s8, %s3121_s29, %s3121_s29, %s3120_s9  }
  0x7f   : > { %s3122_s6 = sld [smem:[#allocation45_spill]] }
  0x85   : > { %s2041_s27 = scalar_lea.hbm %s3122_s6, 1024 }
  0x86   : > { %p2042_p5 = scmp.ne.s32.totalorder %s3122_s6, %s2041_s27  ;;  %p2048_p11 = scmp.lt.u32.totalorder %s2041_s27, %s3122_s6 }
  0x88   : > { %p2044_p3 = pnand %p2042_p5, %p2517_p7 }
  0x8a   : > { %p2045_p8 = pneg %p2044_p3 }
  0x8c   : > { %p2050_p4 = pnand %p2048_p11, %p2045_p8 }
  0x8e   : > { %2053 = shalt.err (!%p2050_p4)
}
  0x8f   : > { %s2054_s5 = scalar_lea.vmem %s341_s21, 1024  ;;  %p2062_p1 = scmp.lt.s32.totalorder %s341_s21, %s341_s21 }
  0x90   : > { %p2055_p10 = scmp.ne.s32.totalorder %s341_s21, %s2054_s5  ;;  %p2063_p6 = scmp.lt.s32.totalorder %s2054_s5, %s2054_s5 }
  0x92   : > { %p2057_p13 = pnand %p2055_p10, %p2517_p7  ;;  %p2064_p9 = por %p2063_p6, %p2062_p1 }
  0x94   : > { %p2058_p2 = pneg %p2057_p13 }
  0x96   : > { %p2065_p0 = pnand %p2064_p9, %p2058_p2 }
  0x98   : > { %2068 = shalt.err (!%p2065_p0)
}
  0x99   : > { %s2373_s23 = smov 64   ;;  %s2374_s3 = smov 4  }
  0x9a   : > { %p3123_p5 = scmp.ne.s32.totalorder %s3110_s24, 0  ;;  %s2375_s2 = smov [#allocation18]  }
  0x9b   : > { %s353_s25 = sshll.u32 %s2375_s2, 4  ;;  %s3124_s7 = sld [smem:[#allocation46_spill]]  ;;  %s354_s25 = int_to_ptr.vmem [resolvable:$true] %s353_s25 }
  0x9c   : > { %1750 = dma.hbm_to_vmem [thread:$0]  (!%p3123_p5), %s3122_s6, 1024, %s341_s21, [#allocation16], %s2373_s23, %s2373_s23, %s2374_s3  }
  0xa1   : > { %s2069_s4 = scalar_lea.hbm %s3124_s7, 1024 }
  0xa2   : > { %p2070_p0 = scmp.ne.s32.totalorder %s3124_s7, %s2069_s4  ;;  %p2076_p11 = scmp.lt.u32.totalorder %s2069_s4, %s3124_s7 }
  0xa4   : > { %p2072_p3 = pnand %p2070_p0, %p2517_p7 }
  0xa6   : > { %p2073_p8 = pneg %p2072_p3 }
  0xa8   : > { %p2078_p4 = pnand %p2076_p11, %p2073_p8 }
  0xaa   : > { %2081 = shalt.err (!%p2078_p4)
}
  0xab   : > { %s2082_s21 = scalar_lea.vmem %s354_s25, 1024  ;;  %p2090_p1 = scmp.lt.s32.totalorder %s354_s25, %s354_s25 }
  0xac   : > { %p2083_p10 = scmp.ne.s32.totalorder %s354_s25, %s2082_s21  ;;  %p2091_p6 = scmp.lt.s32.totalorder %s2082_s21, %s2082_s21 }
  0xae   : > { %p2085_p13 = pnand %p2083_p10, %p2517_p7  ;;  %p2092_p9 = por %p2091_p6, %p2090_p1 }
  0xb0   : > { %p2086_p2 = pneg %p2085_p13 }
  0xb2   : > { %p2093_p12 = pnand %p2092_p9, %p2086_p2 }
  0xb4   : > { %2096 = shalt.err (!%p2093_p12)
}
  0xb5   : > { %1753 = dma.hbm_to_vmem [thread:$0]  (!%p3123_p5), %s3124_s7, 1024, %s354_s25, [#allocation19], %s2373_s23, %s2373_s23, %s2374_s3  }
  0xb6   : > { %s3125_s13 = sshll.u32 %s2361_s18, 8  ;;  %s3126_s0 = sld [smem:[#allocation39_spill]] }
  0xb7   : > { %s371_s2 = scalar_lea.vmem [#allocation6], %s2580_s28  ;;  %s3127_s27 = sand.u32 1, %s2345_s14  }
  0xb8   : > { %s378_s24 = sshll.u32 %s371_s2, 4  ;;  %s2684_s15 = scalar_lea.sflag [#allocation7], %s3127_s27  ;;  %s2680_s24 = int_to_ptr.vmem [resolvable:$true] %s378_s24 }
  0xb9   : > { %p3128_p12 = scmp.ne.s32.totalorder %s3117_s26, 0 }
  0xbb   : > { %p3129_p5 = pneg %p3128_p12 }
  0xbc   : > { %s2677_s12 = scalar_lea.hbm %s3126_s0, %s3125_s13  ;;  %s2102_s25 = scalar_lea.hbm %s3126_s0, 512 }
  0xbd   : > { %s2097_s4 = scalar_lea.hbm %s2677_s12, 256  ;;  %p2103_p8 = scmp.lt.u32.totalorder %s2677_s12, %s3126_s0 }
  0xbe   : > { %p2098_p7 = scmp.ne.s32.totalorder %s2677_s12, %s2097_s4  ;;  %p2104_p11 = scmp.lt.u32.totalorder %s2102_s25, %s2097_s4 }
  0xbf   : > { %p2106_p10 = scmp.lt.u32.totalorder %s2097_s4, %s2677_s12 }
  0xc0   : > { %p2100_p0 = pnand %p2098_p7, %p3129_p5  ;;  %p2105_p4 = por %p2104_p11, %p2103_p8 }
  0xc2   : > { %p2101_p3 = pneg %p2100_p0  ;;  %p2107_p13 = por %p2106_p10, %p2105_p4 }
  0xc4   : > { %p2108_p2 = pnand %p2107_p13, %p2101_p3 }
  0xc6   : > { %2111 = shalt.err (!%p2108_p2)
}
  0xc7   : > { %s2112_s28 = scalar_lea.vmem %s2680_s24, 256  ;;  %p3130_p6 = pmov %p3129_p5 }
  0xc8   : > { %p2113_p1 = scmp.ne.s32.totalorder %s2680_s24, %s2112_s28  ;;  %s2376_s16 = smov [#allocation6]  }
  0xc9   : > { %s2117_s1 = sshll.u32 %s2376_s16, 4  ;;  %s2118_s1 = int_to_ptr.vmem [resolvable:$false] %s2117_s1 }
  0xca   : > { %p2115_p9 = pnand %p2113_p1, %p3130_p6  ;;  %s2119_s13 = scalar_lea.vmem %s2118_s1, 512 }
  0xcb   : > { %p2120_p5 = scmp.lt.s32.totalorder %s2680_s24, %s2118_s1  ;;  %p2121_p0 = scmp.lt.s32.totalorder %s2119_s13, %s2112_s28 }
  0xcc   : > { %p2116_p7 = pneg %p2115_p9 }
  0xcd   : > { %p2122_p8 = por %p2121_p0, %p2120_p5 }
  0xcf   : > { %p2123_p11 = pnand %p2122_p8, %p2116_p7 }
  0xd1   : > { %2126 = shalt.err (!%p2123_p11)
}
  0xd2   : > { %1757 = dma.hbm_to_vmem [thread:$0]  (!%p3128_p12), %s2677_s12, 256, %s2680_s24, %s2684_s15, %s3121_s29, %s3121_s29, %s3120_s9  }
  0xd3   : > { %s1532_s26 = sadd.s32 4294967294, %s2365_s19   ;;  %s46_s8 = sadd.s32 1, %s2357_s17 }
  0xd4   : > { %s49_s22 = sadd.s32 1, %s2361_s18  ;;  %p47_p3 = scmp.ge.s32.totalorder %s46_s8, 2 }
  0xd5   : > { %s110_s2 = sadd.s32 1, %s2333_s11  ;;  %p117_p4 = scmp.ne.s32.totalorder %s2333_s11, %s2329_s10 }
  0xd6   : > { %p123_p10 = scmp.ne.s32.totalorder %s2329_s10, %s2325_s30  ;;  %s3176_s8 = smov (%p47_p3, %s46_s8), 0 }
  0xd7   : > { %s3178_s22 = smov (!%p47_p3, %s49_s22), %s2361_s18  ;;  %s106_s27 = ssub.s32 %s2357_s17, %s3176_s8 }
  0xd8   : > { %p3131_p13 = scmp.eq.s32.totalorder %s2365_s19, 0  ;;  %p51_p12 = scmp.ge.s32.totalorder %s3178_s22, 2 }
  0xd9   : > { %p3133_p1 = scmp.eq.s32.totalorder %s2490_s20, 0  ;;  %p261_p9 = scmp.eq.s32.totalorder %s2490_s20, 3 }
  0xda   : > { %p2728_p2 = por %p117_p4, %p3131_p13  ;;  %p267_p7 = scmp.eq.s32.totalorder %s1532_s26, 3 }
  0xdb   : > { %p2734_p6 = por %p123_p10, %p3133_p1  ;;  %s3180_s22 = smov (%p51_p12, %s3178_s22), 0 }
  0xdc   : > { %3135 = sst [smem:[#allocation38_spill]] %s3180_s22  ;;  %p2741_p5 = por %p261_p9, %p117_p4 }
  0xdd   : > { %s3134_s29 = scalar_select %p2734_p6, 1, 0 }
  0xde   : > { %s3136_s12 = scalar_select %p2741_p5, 1, 0 }
  0xdf   : > { %p2745_p0 = por %p267_p7, %p123_p10  ;;  %s53_s15 = ssub.s32 %s2361_s18, %s3180_s22 }
  0xe0   : > { %s411_s4 = sand.u32 1, %s2333_s11   ;;  %p54_p8 = scmp.eq.s32.totalorder %s53_s15, 0 }
  0xe1   : > { %s3137_s24 = scalar_select %p2745_p0, 1, 0 }
  0xe2   : > { %s107_s23 = sor.u32 %s106_s27, %s53_s15  ;;  %s2752_s3 = sshll.u32 %s411_s4, 3 }
  0xe3   : > { %p108_p11 = scmp.eq.s32.totalorder %s107_s23, 0  ;;  %s3138_s25 = sadd.s32 1, %s2345_s14 }
  0xe4   : > { %s2757_s5 = scalar_select %p54_p8, %s2345_s14, %s3138_s25  }
  0xe5   : > { %s2760_s21 = scalar_select %p108_p11, %s2333_s11, %s110_s2  }
  0xe6   : > { %s1546_s28 = sshll.u32 %s2361_s18, 1  ;;  %s413_s1 = scalar_lea.vmem [#allocation11], %s2752_s3 }
  0xe7   : > { %s418_s16 = sadd.s32 %s2357_s17, %s1546_s28  ;;  %s422_s13 = sshll.u32 %s413_s1, 4  ;;  %s2765_s13 = int_to_ptr.vmem [resolvable:$true] %s422_s13 }
  0xe8   : > { %s1547_s26 = sshll.u32 %s418_s16, 7  ;;  %s3139_s7 = sld [smem:[#allocation41_spill]] }
  0xe9   : > { %p3140_p3 = scmp.lt.s32.totalorder %s2365_s19, 4  ;;  %s3142_s23 = sld [smem:[#allocation42_spill]] }
  0xeb   : > { %p2776_p4 = pnand %p3140_p3, %p2728_p2 }
  0xed   : > { %p2129_p13 = pneg %p2776_p4 }
  0xee   : > { %s2770_s27 = scalar_lea.hbm %s3139_s7, %s1547_s26  ;;  %s2132_s28 = scalar_lea.hbm %s3139_s7, 512 }
  0xef   : > { %s2783_s25 = scalar_lea.hbm %s3142_s23, %s1547_s26  ;;  %s2127_s0 = scalar_lea.hbm %s2770_s27, 128 }
  0xf0   : > { %p2128_p10 = scmp.ne.s32.totalorder %s2770_s27, %s2127_s0  ;;  %p2133_p2 = scmp.lt.u32.totalorder %s2770_s27, %s3139_s7 }
  0xf1   : > { %p2134_p9 = scmp.lt.u32.totalorder %s2132_s28, %s2127_s0  ;;  %p2136_p8 = scmp.lt.u32.totalorder %s2127_s0, %s2770_s27 }
  0xf2   : > { %p2130_p12 = pnand %p2129_p13, %p2128_p10 }
  0xf3   : > { %p2135_p7 = por %p2134_p9, %p2133_p2 }
  0xf4   : > { %p2131_p1 = pneg %p2130_p12 }
  0xf5   : > { %p2137_p11 = por %p2136_p8, %p2135_p7 }
  0xf7   : > { %p2138_p3 = pnand %p2137_p11, %p2131_p1 }
  0xf9   : > { %2141 = shalt.err (!%p2138_p3)
}
  0xfa   : > { %s2142_s26 = scalar_lea.vmem %s2765_s13, 128  ;;  %s2377_s15 = smov [#allocation11]  }
  0xfb   : > { %p2143_p10 = scmp.ne.s32.totalorder %s2765_s13, %s2142_s26  ;;  %s2147_s4 = sshll.u32 %s2377_s15, 4  ;;  %s2148_s4 = int_to_ptr.vmem [resolvable:$false] %s2147_s4 }
  0xfc   : > { %s2149_s6 = scalar_lea.vmem %s2148_s4, 256  ;;  %p2150_p5 = scmp.lt.s32.totalorder %s2765_s13, %s2148_s4 }
  0xfd   : > { %p2145_p12 = pnand %p2143_p10, %p2129_p13  ;;  %p2151_p2 = scmp.lt.s32.totalorder %s2149_s6, %s2142_s26 }
  0xff   : > { %p2146_p0 = pneg %p2145_p12  ;;  %p2152_p9 = por %p2151_p2, %p2150_p5 }
 0x101   : > { %p2153_p7 = pnand %p2152_p9, %p2146_p0 }
 0x103   : > { %2156 = shalt.err (!%p2153_p7)
}
 0x104   : > { %s3143_s0 = sld [smem:[#allocation37_spill]]  ;;  %s433_s9 = scalar_lea.vmem [#allocation12], %s2752_s3 }
 0x105   : > { %s442_s28 = sshll.u32 %s433_s9, 4  ;;  %s3144_s16 = sand.u32 1, %s2365_s19   ;;  %s443_s28 = int_to_ptr.vmem [resolvable:$true] %s442_s28 }
 0x106   : > { %s430_s1 = scalar_lea.sflag [#allocation13], %s3144_s16  ;;  %s2157_s26 = scalar_lea.hbm %s2783_s25, 128 }
 0x107   : > { %p2158_p5 = scmp.ne.s32.totalorder %s2783_s25, %s2157_s26  ;;  %s2162_s6 = scalar_lea.hbm %s3142_s23, 512 }
 0x108   : > { %p2163_p8 = scmp.lt.u32.totalorder %s2783_s25, %s3142_s23  ;;  %p2164_p11 = scmp.lt.u32.totalorder %s2162_s6, %s2157_s26 }
 0x109   : > { %p2160_p0 = pnand %p2158_p5, %p2129_p13  ;;  %p2166_p10 = scmp.lt.u32.totalorder %s2157_s26, %s2783_s25 }
 0x10a   : > { %1763 = dma.hbm_to_vmem [thread:$0]  (!%p2776_p4), %s2770_s27, 128, %s2765_s13, %s3143_s0  }
 0x10b   : > { %p2161_p1 = pneg %p2160_p0  ;;  %p2165_p3 = por %p2164_p11, %p2163_p8 }
 0x10d   : > { %p2167_p12 = por %p2166_p10, %p2165_p3 }
 0x10f   : > { %p2168_p2 = pnand %p2167_p12, %p2161_p1 }
 0x111   : > { %2171 = shalt.err (!%p2168_p2)
}
 0x112   : > { %s2172_s3 = scalar_lea.vmem %s443_s28, 128  ;;  %s2378_s13 = smov [#allocation12]  }
 0x113   : > { %p2173_p9 = scmp.ne.s32.totalorder %s443_s28, %s2172_s3  ;;  %s2177_s27 = sshll.u32 %s2378_s13, 4  ;;  %s2178_s27 = int_to_ptr.vmem [resolvable:$false] %s2177_s27 }
 0x114   : > { %s2179_s0 = scalar_lea.vmem %s2178_s27, 256  ;;  %p2180_p0 = scmp.lt.s32.totalorder %s443_s28, %s2178_s27 }
 0x115   : > { %p2175_p7 = pnand %p2173_p9, %p2129_p13  ;;  %p2181_p6 = scmp.lt.s32.totalorder %s2179_s0, %s2172_s3 }
 0x117   : > { %p2176_p5 = pneg %p2175_p7  ;;  %p2182_p8 = por %p2181_p6, %p2180_p0 }
 0x119   : > { %p2183_p11 = pnand %p2182_p8, %p2176_p5 }
 0x11b   : > { %2186 = shalt.err (!%p2183_p11)
}
 0x11c   : > { %1766 = dma.hbm_to_vmem [thread:$0]  (!%p2776_p4), %s2783_s25, 128, %s443_s28, %s430_s1  }
 0x11d   : > { %s3145_s7 = sld [smem:[#allocation35_spill]] }
 0x123   : > { %p3146_p1 = scmp.ne.s32.totalorder %s3145_s7, 0 }
 0x124   : > { %s3147_s22 = sld [smem:[#allocation32_spill]] (!%p3146_p1)  ;;  %s3148_s9 = sld [smem:[#allocation36_spill]] (!%p3146_p1) }
 0x125   : > { %451 = sbr.rel (%p3146_p1) target bundleno = 1615 (0x64f), region = 52 }
 0x12a   : > { %s453_s16 = sand.u32 (!%p3146_p1), 1, %s3147_s22   ;;  %p3149_p13 = scmp.ne.s32.totalorder (!%p3146_p1), %s3148_s9, 0 }
 0x12b   : > { %s2836_s26 = sshll.u32 (!%p3146_p1), %s453_s16, 4  ;;  %s454_s15 = scalar_lea.sflag (!%p3146_p1), [#allocation7], %s453_s16 }
 0x12c   : > { %s457_s4 = scalar_lea.vmem [#allocation6], %s2836_s26 }
 0x12d   : > { %2288 = dma.done.wait (%p3149_p13), %s454_s15, 256  }
 0x12e   : > { %2290 = vsyncadd (%p3149_p13), %s454_s15, 4294967040  ;;  %s462_s2 = sand.u32 1, %s2490_s20   ;;  %s466_s28 = scalar_lea.vmem [#allocation9], %s2836_s26 }
 0x12f   : > { %s463_s25 = scalar_lea.sflag [#allocation10], %s462_s2 }
 0x130   : > { %2292 = dma.done.wait (%p3149_p13), %s463_s25, 256  }
 0x131   : > { %2294 = vsyncadd (%p3149_p13), %s463_s25, 4294967040  ;;  %s2850_s1 = sand.u32 1, %s2329_s10   ;;  %p3150_p6 = scmp.ne.s32.totalorder %s3134_s29, 0 }
 0x132   : > { %s2853_s6 = sshll.u32 %s2850_s1, 3 }
 0x133   : > { %s475_s3 = scalar_lea.vmem [#allocation11], %s2853_s6 }
 0x134   : > { %2296 = dma.done.wait (%p3150_p6), %s463_s25, 128  }
 0x135   : > { %2298 = vsyncadd (%p3150_p6), %s463_s25, 4294967168  ;;  %s481_s13 = scalar_lea.sflag [#allocation13], %s462_s2  ;;  %s484_s27 = scalar_lea.vmem [#allocation12], %s2853_s6 }
 0x136   : > { %2300 = dma.done.wait (%p3150_p6), %s481_s13, 128  }
 0x137   : > { %2302 = vsyncadd (%p3150_p6), %s481_s13, 4294967168  ;;  %p3151_p4 = scmp.eq.s32.totalorder %s2490_s20, 0 }
 0x139   : > { %2304 = dma.done.wait (%p3151_p4), [#allocation13], 2048   ;;  %p3152_p3 = pmov %p3151_p4 }
 0x13b   : > { %2306 = vsyncadd (%p3152_p3), [#allocation13], 4294965248  ;;  %p3153_p10 = pmov %p3152_p3 }
 0x13c   : > { %p3154_p12 = pmov %p3152_p3 }
 0x13d   : > { %2308 = dma.done.wait (%p3153_p10), [#allocation16], 3072  }
 0x13e   : > { %2310 = vsyncadd (%p3154_p12), [#allocation16], 4294964224  ;;  %p3155_p2 = pmov %p3152_p3 }
 0x140   : > { %2312 = dma.done.wait (%p3155_p2), [#allocation19], 1024   ;;  %p3156_p9 = pmov %p3155_p2 }
 0x141   : > { %s547_s29 = scalar_lea.vmem [#allocation20], %s2853_s6  ;;  %s554_s0 = scalar_lea.vmem [#allocation21], %s2853_s6 }
 0x142   : > { %2314 = vsyncadd (%p3156_p9), [#allocation19], 4294966272  ;;  %s3157_s7 = sld [smem:[#allocation33_spill]] }
 0x148   : > { %p1562_p7 = scmp.ne.s32.totalorder %s3157_s7, 0 }
 0x149   : > { %v1883_v0 = vld [vmem:[#allocation14 + $0x4] ss:$8 sps:$4 sm:$0xff] (!%p1562_p7)   ;;  %v2379_v2 = vmov (!%p1562_p7), 0   ;;  %v1887_v3 = vld [vmem:[#allocation14] ss:$8 sps:$4 sm:$0xff] (!%p1562_p7)  }
 0x14a   : > { %559 = sbr.rel (%p1562_p7) target bundleno = 581 (0x245), region = 88  ;;  %v1885_v1 = vld [vmem:[#allocation15 + $0x4] ss:$8 sps:$4 sm:$0xff] (!%p1562_p7)   ;;  %694 = vmatprep.mubr.bf16.mxu0 (!%p1562_p7), %v2379_v2  ;;  %833 = vmatprep.mubr.bf16.mxu1 (!%p1562_p7), %v2379_v2  ;;  %v1888_v4 = vld [vmem:[#allocation15] ss:$8 sps:$4 sm:$0xff] (!%p1562_p7)  }
 0x14b   : > { %662 = vmatprep.subr.bf16.mxu0 (!%p1562_p7), %v1883_v0  ;;  %801 = vmatprep.subr.bf16.mxu1 (!%p1562_p7), %v1885_v1  ;;  %v1889_v5 = vld [vmem:[#allocation14 + $0x14] ss:$8 sps:$4 sm:$0xff] (!%p1562_p7)   ;;  %v1893_v7 = vld [vmem:[#allocation14 + $0x10] ss:$8 sps:$4 sm:$0xff] (!%p1562_p7)   ;;  %v1895_v9 = vld [vmem:[#allocation14 + $0x24] ss:$8 sps:$4 sm:$0xff] (!%p1562_p7)  }
 0x14c   : > { %663 = vmatpush1.bf16.msra.mxu0 (!%p1562_p7), %v1887_v3  ;;  %802 = vmatpush1.bf16.msra.mxu1 (!%p1562_p7), %v1888_v4  ;;  %v1891_v6 = vld [vmem:[#allocation15 + $0x14] ss:$8 sps:$4 sm:$0xff] (!%p1562_p7)   ;;  %v1894_v8 = vld [vmem:[#allocation15 + $0x10] ss:$8 sps:$4 sm:$0xff] (!%p1562_p7)   ;;  %v1897_v10 = vld [vmem:[#allocation15 + $0x24] ss:$8 sps:$4 sm:$0xff] (!%p1562_p7)  }
 0x14d   : > { %664 = vmatprep.subr.bf16.mxu0 (!%p1562_p7), %v1889_v5  ;;  %803 = vmatprep.subr.bf16.mxu1 (!%p1562_p7), %v1891_v6  ;;  %v1899_v11 = vld [vmem:[#allocation14 + $0x20] ss:$8 sps:$4 sm:$0xff] (!%p1562_p7)   ;;  %v1901_v13 = vld [vmem:[#allocation14 + $0x34] ss:$8 sps:$4 sm:$0xff] (!%p1562_p7)   ;;  %v1905_v15 = vld [vmem:[#allocation14 + $0x30] ss:$8 sps:$4 sm:$0xff] (!%p1562_p7)  }
 0x14e   : > { %v1900_v12 = vld [vmem:[#allocation15 + $0x20] ss:$8 sps:$4 sm:$0xff] (!%p1562_p7)   ;;  %v1903_v14 = vld [vmem:[#allocation15 + $0x34] ss:$8 sps:$4 sm:$0xff] (!%p1562_p7)   ;;  %v1906_v16 = vld [vmem:[#allocation15 + $0x30] ss:$8 sps:$4 sm:$0xff] (!%p1562_p7)  }
 0x14f   : > { %v1907_v17 = vld [vmem:[#allocation14 + $0x44] ss:$8 sps:$4 sm:$0xff] (!%p1562_p7)   ;;  %v1911_v19 = vld [vmem:[#allocation14 + $0x40] ss:$8 sps:$4 sm:$0xff] (!%p1562_p7)   ;;  %v1913_v21 = vld [vmem:[#allocation14 + $0x54] ss:$8 sps:$4 sm:$0xff] (!%p1562_p7)  }
 0x150   : > { %665 = vmatpush1.bf16.msra.mxu0 (!%p1562_p7), %v1893_v7  ;;  %804 = vmatpush1.bf16.msra.mxu1 (!%p1562_p7), %v1894_v8  ;;  %v1909_v18 = vld [vmem:[#allocation15 + $0x44] ss:$8 sps:$4 sm:$0xff] (!%p1562_p7)   ;;  %v1912_v20 = vld [vmem:[#allocation15 + $0x40] ss:$8 sps:$4 sm:$0xff] (!%p1562_p7)   ;;  %v1915_v22 = vld [vmem:[#allocation15 + $0x54] ss:$8 sps:$4 sm:$0xff] (!%p1562_p7)  }
 0x151   : > { %666 = vmatprep.subr.bf16.mxu0 %v1895_v9  ;;  %805 = vmatprep.subr.bf16.mxu1 %v1897_v10  ;;  %v1917_v23 = vld [vmem:[#allocation14 + $0x50] ss:$8 sps:$4 sm:$0xff]   ;;  %v1919_v25 = vld [vmem:[#allocation14 + $0x64] ss:$8 sps:$4 sm:$0xff]   ;;  %v1923_v27 = vld [vmem:[#allocation14 + $0x60] ss:$8 sps:$4 sm:$0xff]  }
 0x152   : > { %v1918_v24 = vld [vmem:[#allocation15 + $0x50] ss:$8 sps:$4 sm:$0xff]   ;;  %v1921_v26 = vld [vmem:[#allocation15 + $0x64] ss:$8 sps:$4 sm:$0xff]   ;;  %v1924_v28 = vld [vmem:[#allocation15 + $0x60] ss:$8 sps:$4 sm:$0xff]  }
 0x153   : > { %v1925_v29 = vld [vmem:[#allocation14 + $0x74] ss:$8 sps:$4 sm:$0xff]   ;;  %v1929_v31 = vld [vmem:[#allocation14 + $0x70] ss:$8 sps:$4 sm:$0xff]  }
 0x154   : > { %667 = vmatpush1.bf16.msra.mxu0 %v1899_v11  ;;  %806 = vmatpush1.bf16.msra.mxu1 %v1900_v12  ;;  %v1927_v30 = vld [vmem:[#allocation15 + $0x74] ss:$8 sps:$4 sm:$0xff]   ;;  %v1930_v32 = vld [vmem:[#allocation15 + $0x70] ss:$8 sps:$4 sm:$0xff]  }
 0x155   : > { %668 = vmatprep.subr.bf16.mxu0 %v1901_v13  ;;  %807 = vmatprep.subr.bf16.mxu1 %v1903_v14  ;;  %v560_v33 = vld [vmem:[%s457_s4] sm:$0xff]  ;;  %v561_v34 = vld [vmem:[%s457_s4 + $0x8] sm:$0xff] }
 0x156   : > { %v563_v35 = vld [vmem:[%s466_s28] sm:$0xff]  ;;  %v564_v36 = vld [vmem:[%s466_s28 + $0x8] sm:$0xff]  ;;  %v562_v37 = vpack.c.bf16 %v561_v34, %v560_v33 }
 0x157   : > { %v565_v38 = vpack.c.bf16 %v564_v36, %v563_v35 }
 0x158   : > { %669 = vmatpush1.bf16.msra.mxu0 %v1905_v15  ;;  %808 = vmatpush1.bf16.msra.mxu1 %v1906_v16 }
 0x159   : > { %670 = vmatprep.subr.bf16.mxu0 %v1907_v17  ;;  %809 = vmatprep.subr.bf16.mxu1 %v1909_v18 }
 0x15c   : > { %671 = vmatpush1.bf16.msra.mxu0 %v1911_v19  ;;  %810 = vmatpush1.bf16.msra.mxu1 %v1912_v20 }
 0x15d   : > { %672 = vmatprep.subr.bf16.mxu0 %v1913_v21  ;;  %811 = vmatprep.subr.bf16.mxu1 %v1915_v22 }
 0x160   : > { %673 = vmatpush1.bf16.msra.mxu0 %v1917_v23  ;;  %812 = vmatpush1.bf16.msra.mxu1 %v1918_v24 }
 0x161   : > { %674 = vmatprep.subr.bf16.mxu0 %v1919_v25  ;;  %813 = vmatprep.subr.bf16.mxu1 %v1921_v26 }
 0x164   : > { %675 = vmatpush1.bf16.msra.mxu0 %v1923_v27  ;;  %814 = vmatpush1.bf16.msra.mxu1 %v1924_v28 }
 0x165   : > { %676 = vmatprep.subr.bf16.mxu0 %v1925_v29  ;;  %815 = vmatprep.subr.bf16.mxu1 %v1927_v30 }
 0x168   : > { %677 = vmatpush1.bf16.msra.mxu0 %v1929_v31  ;;  %816 = vmatpush1.bf16.msra.mxu1 %v1930_v32 }
 0x16b   : > { %695 = vmatmul.mubr.bf16.vlgmr.msra.gmra.mrb[0].mxu0 %v562_v37  ;;  %834 = vmatmul.mubr.bf16.vlgmr.msra.gmra.mrb[0].mxu1 %v565_v38 }
 0x23e   : > { %v696_v39 = vpop.f32.mrb[0].mxu0  ;;  %v835_v40 = vpop.f32.mrb[0].mxu1 }
 0x23f   : > { %v698_v41 = vpop.f32.mrb[1].mxu0  ;;  %v837_v42 = vpop.f32.mrb[1].mxu1 }
 0x240   : > { %v700_v43 = vpop.f32.mrb[2].mxu0  ;;  %v839_v44 = vpop.f32.mrb[2].mxu1 }
 0x241   : > { %v844_v45 = vpack.c.bf16 %v700_v43, %v696_v39  ;;  %v848_v46 = vpack.c.bf16 %v839_v44, %v835_v40  ;;  %v702_v47 = vpop.f32.mrb[3].mxu0  ;;  %v841_v48 = vpop.f32.mrb[3].mxu1 }
 0x242   : > { %v846_v49 = vpack.c.bf16 %v702_v47, %v698_v41  ;;  %v850_v50 = vpack.c.bf16 %v841_v48, %v837_v42 }
 0x243   : > { %845 = vst [vmem:[#allocation2] sm:$0xff] %v844_v45  ;;  %849 = vst [vmem:[#allocation4] sm:$0xff] %v848_v46 }
 0x244   : > { %847 = vst [vmem:[#allocation3] sm:$0xff] %v846_v49  ;;  %851 = vst [vmem:[#allocation5] sm:$0xff] %v850_v50 }
 0x245 PF: > { %v1931_v51 = vld [vmem:[#allocation18] sm:$0xff]   ;;  %v2380_v52 = vmov 0.0   ;;  %v1933_v54 = vld [vmem:[#allocation18 + $0x8] sm:$0xff]   ;;  %vm2381_vm0 = vmmov 0   ;;  %v1935_v56 = vld [vmem:[#allocation18 + $0x10] sm:$0xff]   ;;  %v1150_v22 = vlaneseq  ;;  %vm1155_vm2 = vcmask 130048  }
 0x246   : > { %1669 = vmatprep.subr.bf16.mxu1 %v2380_v52  ;;  %1649 = vmatprep.subr.bf16.mxu0 %v2380_v52  ;;  %v1932_v53 = vld [vmem:[#allocation17] sm:$0xff]   ;;  %v1934_v55 = vld [vmem:[#allocation17 + $0x8] sm:$0xff]   ;;  %v1936_v57 = vld [vmem:[#allocation17 + $0x10] sm:$0xff]   ;;  %s3158_s20 = sld [smem:[#allocation34_spill]]  ;;  %s3159_s22 = sld [smem:[#allocation33_spill]] }
 0x247   : > { %1670 = vmatpush3.bf16.msra.mxu1 %v1931_v51  ;;  %1685 = vmatprep.mubr.msk.bf16.mxu1 %vm2381_vm0, %v2380_v52  ;;  %v1937_v58 = vld [vmem:[#allocation18 + $0x18] sm:$0xff]   ;;  %v1939_v60 = vld [vmem:[#allocation18 + $0x20] sm:$0xff]   ;;  %v1941_v62 = vld [vmem:[#allocation18 + $0x28] sm:$0xff]   ;;  %v1151_v23 = vand.u32 127, %v1150_v22  ;;  %s1291_s15 = sshll.u32 %s547_s29, 4  ;;  %s3160_s25 = sld [smem:[#allocation47_spill]]  ;;  %s2953_s15 = int_to_ptr.vmem [resolvable:$true] %s1291_s15 }
 0x248   : > { %1650 = vmatpush3.bf16.msra.mxu0 %v1932_v53  ;;  %1671 = vmatprep.subr.bf16.mxu1 %v2380_v52  ;;  %v1938_v59 = vld [vmem:[#allocation17 + $0x18] sm:$0xff]   ;;  %v1940_v61 = vld [vmem:[#allocation17 + $0x20] sm:$0xff]   ;;  %v1942_v63 = vld [vmem:[#allocation17 + $0x28] sm:$0xff]   ;;  %s1271_s13 = scalar_lea.sflag [#allocation8], %s2850_s1  ;;  %p3161_p0 = scmp.ne.s32.totalorder %s3136_s12, 0 }
 0x249   : > { %1651 = vmatprep.subr.bf16.mxu0 %v2380_v52  ;;  %1665 = vmatprep.mubr.msk.bf16.mxu0 %vm2381_vm0, %v2380_v52  ;;  %v1943_v0 = vld [vmem:[#allocation18 + $0x30] sm:$0xff]   ;;  %v1945_v2 = vld [vmem:[#allocation18 + $0x38] sm:$0xff]   ;;  %v2913_v5 = vld [vmem:[%s475_s3] sm:$0xff]  ;;  %vm1152_vm1 = vcmp.lt.s32.totalorder %v1151_v23, 12  ;;  %s2957_s3 = sshll.u32 %s554_s0, 4  ;;  %s2382_s7 = smov [#allocation20]   ;;  %s2992_s3 = int_to_ptr.vmem [resolvable:$true] %s2957_s3 }
 0x24a   : > { %v1944_v1 = vld [vmem:[#allocation17 + $0x30] sm:$0xff]   ;;  %v1946_v4 = vld [vmem:[#allocation17 + $0x38] sm:$0xff]   ;;  %v854_v7 = vpack.c.bf16 %v2913_v5, %v2913_v5  ;;  %v1068_v9 = vld [vmem:[#allocation2] sm:$0xff] }
 0x24b   : > { %1672 = vmatpush3.bf16.msra.mxu1 %v1933_v54  ;;  %v2908_v3 = vld [vmem:[%s484_s27] sm:$0xff]  ;;  %v1180_v46 = vld [vmem:[#allocation3] sm:$0xff]  ;;  %s2187_s27 = scalar_lea.vmem %s2953_s15, 128 }
 0x24c   : > { %1652 = vmatpush3.bf16.msra.mxu0 %v1934_v55  ;;  %1673 = vmatprep.subr.bf16.mxu1 %v2380_v52  ;;  %v961_v6 = vpack.c.bf16 %v2908_v3, %v2908_v3  ;;  %v1109_v8 = vld [vmem:[#allocation4] sm:$0xff]  ;;  %v1181_v47 = vld [vmem:[#allocation5] sm:$0xff]  ;;  %s1615_s9 = sshll.u32 %s3158_s20, 1  ;;  %p2188_p5 = scmp.ne.s32.totalorder %s2953_s15, %s2187_s27 }
 0x24d   : > { %1653 = vmatprep.subr.bf16.mxu0 %v2380_v52  ;;  %s2940_s16 = sadd.s32 %s3159_s22, %s1615_s9  ;;  %s2191_s20 = sshll.u32 %s2382_s7, 4  ;;  %s2192_s20 = int_to_ptr.vmem [resolvable:$false] %s2191_s20 }
 0x24e   : > { %s1616_s26 = sshll.u32 %s2940_s16, 7  ;;  %p2189_p8 = pnand %p2188_p5, %p3161_p0 }
 0x24f   : > { %1674 = vmatpush3.bf16.msra.mxu1 %v1935_v56  ;;  %s2951_s28 = scalar_lea.hbm %s3160_s25, %s1616_s26  ;;  %s2193_s22 = scalar_lea.vmem %s2192_s20, 256 }
 0x250   : > { %1654 = vmatpush3.bf16.msra.mxu0 %v1936_v57  ;;  %1675 = vmatprep.subr.bf16.mxu1 %v2380_v52  ;;  %p2190_p11 = pneg %p2189_p8  ;;  %p2194_p1 = scmp.lt.s32.totalorder %s2953_s15, %s2192_s20 }
 0x251   : > { %1655 = vmatprep.subr.bf16.mxu0 %v2380_v52  ;;  %p2195_p13 = scmp.lt.s32.totalorder %s2193_s22, %s2187_s27 }
 0x253   : > { %1676 = vmatpush3.bf16.msra.mxu1 %v1937_v58  ;;  %p2196_p6 = por %p2195_p13, %p2194_p1 }
 0x254   : > { %1656 = vmatpush3.bf16.msra.mxu0 %v1938_v59  ;;  %1677 = vmatprep.subr.bf16.mxu1 %v2380_v52 }
 0x255   : > { %1657 = vmatprep.subr.bf16.mxu0 %v2380_v52  ;;  %p2197_p4 = pnand %p2196_p6, %p2190_p11 }
 0x257   : > { %1678 = vmatpush3.bf16.msra.mxu1 %v1939_v60 }
 0x258   : > { %1658 = vmatpush3.bf16.msra.mxu0 %v1940_v61  ;;  %1679 = vmatprep.subr.bf16.mxu1 %v2380_v52 }
 0x259   : > { %1659 = vmatprep.subr.bf16.mxu0 %v2380_v52 }
 0x25b   : > { %1680 = vmatpush3.bf16.msra.mxu1 %v1941_v62 }
 0x25c   : > { %1660 = vmatpush3.bf16.msra.mxu0 %v1942_v63  ;;  %1681 = vmatprep.subr.bf16.mxu1 %v2380_v52 }
 0x25d   : > { %1661 = vmatprep.subr.bf16.mxu0 %v2380_v52 }
 0x25f   : > { %1682 = vmatpush3.bf16.msra.mxu1 %v1943_v0 }
 0x260   : > { %1662 = vmatpush3.bf16.msra.mxu0 %v1944_v1  ;;  %1683 = vmatprep.subr.bf16.mxu1 %v2380_v52 }
 0x261   : > { %1663 = vmatprep.subr.bf16.mxu0 %v2380_v52 }
 0x263   : > { %1684 = vmatpush3.bf16.msra.mxu1 %v1945_v2 }
 0x264   : > { %1664 = vmatpush3.bf16.msra.mxu0 %v1946_v4  ;;  %1695 = vmatprep.subr.bf16.mxu1 %v2380_v52 }
 0x265   : > { %1689 = vmatprep.subr.bf16.mxu0 %v2380_v52 }
 0x266   : > { %1686 = vmatmul.mubr.bf16.vlgmr.msra.gmra.mrb[0].mxu1 %v961_v6 }
 0x267   : > { %1666 = vmatmul.mubr.bf16.vlgmr.msra.gmra.mrb[0].mxu0 %v854_v7  ;;  %1697 = vmatprep.mubr.msk.bf16.mxu1 %vm2381_vm0, %v2380_v52 }
 0x268   : > { %1691 = vmatprep.mubr.msk.bf16.mxu0 %vm2381_vm0, %v2380_v52 }
 0x26c   : > { %1696 = vmatpush3.bf16.xpose.msra.mxu1 %v1109_v8 }
 0x26d   : > { %1690 = vmatpush3.bf16.xpose.msra.mxu0 %v1068_v9  ;;  %1707 = vmatprep.subr.bf16.mxu1 %v2380_v52 }
 0x26e   : > { %1701 = vmatprep.subr.bf16.mxu0 %v2380_v52 }
 0x339   : > { %v1060_v10 = vpop.f32.mrb[0].mxu1 }
 0x33a   : > { %v1066_v11 = vmul.f32 0.17677669, %v1060_v10  ;;  %v953_v12 = vpop.f32.mrb[0].mxu0  ;;  %v1687_v13 = vpop.f32.mrb[1].mxu1 }
 0x33b   : > { %v959_v14 = vmul.f32 0.17677669, %v953_v12  ;;  %v1667_v15 = vpop.f32.mrb[1].mxu0  ;;  %v1063_v16 = vpop.f32.mrb[2].mxu1 }
 0x33c   : > { %v1067_v17 = vpack.c.bf16 %v1066_v11, %v1066_v11  ;;  %v956_v18 = vpop.f32.mrb[2].mxu0  ;;  %v1688_v19 = vpop.f32.mrb[3].mxu1 }
 0x33d   : > { %v960_v20 = vpack.c.bf16 %v959_v14, %v959_v14  ;;  %v1668_v21 = vpop.f32.mrb[3].mxu0 }
 0x33e   : > { %1692 = vmatmul.mubr.bf16.vlgmr.msra.gmra.mrb[4].mxu0 %v1067_v17 }
 0x33f   : > { %1698 = vmatmul.mubr.bf16.vlgmr.msra.gmra.mrb[4].mxu1 %v960_v20  ;;  %1703 = vmatprep.mubr.msk.bf16.mxu0 %vm2381_vm0, %v2380_v52 }
 0x340   : > { %1709 = vmatprep.mubr.msk.bf16.mxu1 %vm2381_vm0, %v2380_v52  ;;  %1702 = vmatpush3.bf16.msra.mxu0 %v1180_v46 }
 0x341   : > { %1708 = vmatpush3.bf16.msra.mxu1 %v1181_v47 }
 0x411   : > { %v1103_v24 = vpop.f32.mrb[4].mxu0 }
 0x412   : > { %v1153_v25 = vsel %vm1152_vm1, %v1103_v24, -1e+09  ;;  %v1693_v26 = vpop.f32.mrb[5].mxu0  ;;  %v1144_v27 = vpop.f32.mrb[4].mxu1 }
 0x413   : > { %v1154_v28 = vsel %vm1152_vm1, %v1144_v27, -1e+09  ;;  %v1106_v29 = vpop.f32.mrb[6].mxu0  ;;  %v1699_v30 = vpop.f32.mrb[5].mxu1  ;;  %v1156_v31 = vsel %vm1155_vm2, %v1153_v25, -inf }
 0x414   : > { %v1147_v32 = vpop.f32.mrb[6].mxu1  ;;  %1157 = vmax.xlane.f32.xlu0 %v1156_v31  ;;  %v1694_v33 = vpop.f32.mrb[7].mxu0  ;;  %v1168_v35 = vsel %vm1155_vm2, %v1154_v28, -inf }
 0x415   : > { %v1700_v34 = vpop.f32.mrb[7].mxu1 }
 0x418   : > { %1169 = vmax.xlane.f32.xlu0 %v1168_v35 }
 0x4a1   : > { %v1158_v36 = vpop.xlane.xlu0 %1157 }
 0x4a2   : > { %v1159_v37 = vsub.f32 %v1153_v25, %v1158_v36 }
 0x4a4   : > { %v1160_v38 = vmul.f32 1.442695, %v1159_v37 }
 0x4a5   : > { %v1170_v39 = vpop.xlane.xlu0 %1169 }
 0x4a6   : > { %1947 = vpow2.f32 %v1160_v38  ;;  %v1171_v40 = vsub.f32 %v1154_v28, %v1170_v39 }
 0x4a8   : > { %v1172_v41 = vmul.f32 1.442695, %v1171_v40 }
 0x4aa   : > { %1949 = vpow2.f32 %v1172_v41 }
 0x4b0   : > { %v1948_v42 = vpop.eup %1947 }
 0x4b1   : > { %v1162_v43 = vsel %vm1155_vm2, %v1948_v42, 0.0 }
 0x4b2   : > { %1163 = vadd.xlane.f32.xlu1 %v1162_v43 }
 0x4b4   : > { %v1950_v44 = vpop.eup %1949 }
 0x4b5   : > { %v1174_v45 = vsel %vm1155_vm2, %v1950_v44, 0.0 }
 0x4b6   : > { %1175 = vadd.xlane.f32.xlu1 %v1174_v45 }
 0x53f   : > { %v1164_v48 = vpop.xlane.xlu1 %1163 }
 0x540   : > { %1951 = vrcp.f32 %v1164_v48 }
 0x543   : > { %v1176_v49 = vpop.xlane.xlu1 %1175 }
 0x544   : > { %1953 = vrcp.f32 %v1176_v49 }
 0x54a   : > { %v1952_v50 = vpop.eup %1951 }
 0x54b   : > { %v1166_v51 = vmul.f32 %v1952_v50, %v1948_v42 }
 0x54d   : > { %v1167_v52 = vpack.c.bf16 %v1166_v51, %v1166_v51 }
 0x54e   : > { %v1954_v53 = vpop.eup %1953 }
 0x54f   : > { %v1178_v54 = vmul.f32 %v1954_v53, %v1950_v44  ;;  %1704 = vmatmul.mubr.msk.bf16.vlgmr.msra.gmra.mrb[8].mxu0 %vm1155_vm2, %v1167_v52 }
 0x551   : > { %v1179_v55 = vpack.c.bf16 %v1178_v54, %v1178_v54 }
 0x553   : > { %1710 = vmatmul.mubr.msk.bf16.vlgmr.msra.gmra.mrb[8].mxu1 %vm1155_vm2, %v1179_v55 }
 0x622   : > { %v1219_v56 = vpop.f32.mrb[8].mxu0 }
 0x623   : > { %v1220_v57 = vadd.f32 %v1219_v56, %v2908_v3  ;;  %v1705_v58 = vpop.f32.mrb[9].mxu0 }
 0x624   : > { %v1222_v59 = vpop.f32.mrb[10].mxu0 }
 0x625   : > { %1268 = vst [vmem:[%s547_s29] sm:$0xff] %v1220_v57  ;;  %v1706_v60 = vpop.f32.mrb[11].mxu0 }
 0x626   : > { %v1262_v61 = vpop.f32.mrb[8].mxu1 }
 0x627   : > { %2200 = shalt.err (!%p2197_p4)
}
 0x628   : > { %s2201_s29 = scalar_lea.hbm %s2951_s28, 128  ;;  %s2205_s2 = scalar_lea.hbm %s3160_s25, 512 }
 0x629   : > { %p2202_p3 = scmp.ne.s32.totalorder %s2951_s28, %s2201_s29  ;;  %p2206_p2 = scmp.lt.u32.totalorder %s2951_s28, %s3160_s25 }
 0x62a   : > { %p2207_p9 = scmp.lt.u32.totalorder %s2205_s2, %s2201_s29  ;;  %p2209_p5 = scmp.lt.u32.totalorder %s2201_s29, %s2951_s28 }
 0x62b   : > { %p2203_p10 = pnand %p2202_p3, %p3161_p0 }
 0x62c   : > { %p2208_p7 = por %p2207_p9, %p2206_p2 }
 0x62d   : > { %p2204_p12 = pneg %p2203_p10 }
 0x62e   : > { %p2210_p8 = por %p2209_p5, %p2208_p7 }
 0x630   : > { %p2211_p11 = pnand %p2210_p8, %p2204_p12 }
 0x632   : > { %2214 = shalt.err (!%p2211_p11)
}
 0x633   : > { %1737 = dma.vmem_to_hbm [thread:$0]  (%p3161_p0), %s2953_s15, 128, %s2951_s28, %s1271_s13   ;;  %v1263_v62 = vadd.f32 %v1262_v61, %v2913_v5  ;;  %v1711_v63 = vpop.f32.mrb[9].mxu1 }
 0x634   : > { %s3162_s29 = sld [smem:[#allocation48_spill]]  ;;  %v1265_v0 = vpop.f32.mrb[10].mxu1  ;;  %s1276_s4 = scalar_lea.sflag [#allocation22], %s2850_s1 }
 0x635   : > { %1269 = vst [vmem:[%s554_s0] sm:$0xff] %v1263_v62  ;;  %v1712_v1 = vpop.f32.mrb[11].mxu1  ;;  %s2215_s15 = scalar_lea.vmem %s2992_s3, 128  ;;  %s2383_s16 = smov [#allocation21]  }
 0x636   : > { %p2216_p1 = scmp.ne.s32.totalorder %s2992_s3, %s2215_s15  ;;  %s2219_s28 = sshll.u32 %s2383_s16, 4  ;;  %s2220_s28 = int_to_ptr.vmem [resolvable:$false] %s2219_s28 }
 0x637   : > { %p2222_p4 = scmp.lt.s32.totalorder %s2992_s3, %s2220_s28 }
 0x638   : > { %p2217_p13 = pnand %p2216_p1, %p3161_p0 }
 0x63a   : > { %s2989_s9 = scalar_lea.hbm %s3162_s29, %s1616_s26  ;;  %p2218_p6 = pneg %p2217_p13 }
 0x63b   : > { %s2221_s26 = scalar_lea.vmem %s2220_s28, 256 }
 0x63c   : > { %p2223_p3 = scmp.lt.s32.totalorder %s2221_s26, %s2215_s15 }
 0x63e   : > { %p2224_p10 = por %p2223_p3, %p2222_p4 }
 0x640   : > { %p2225_p12 = pnand %p2224_p10, %p2218_p6 }
 0x642   : > { %2228 = shalt.err (!%p2225_p12)
}
 0x643   : > { %s2229_s1 = scalar_lea.hbm %s2989_s9, 128  ;;  %s2233_s13 = scalar_lea.hbm %s3162_s29, 512 }
 0x644   : > { %p2230_p2 = scmp.ne.s32.totalorder %s2989_s9, %s2229_s1  ;;  %p2234_p5 = scmp.lt.u32.totalorder %s2989_s9, %s3162_s29 }
 0x645   : > { %p2235_p8 = scmp.lt.u32.totalorder %s2233_s13, %s2229_s1  ;;  %p2237_p1 = scmp.lt.u32.totalorder %s2229_s1, %s2989_s9 }
 0x646   : > { %p2231_p9 = pnand %p2230_p2, %p3161_p0 }
 0x647   : > { %p2236_p11 = por %p2235_p8, %p2234_p5 }
 0x648   : > { %p2232_p7 = pneg %p2231_p9 }
 0x649   : > { %p2238_p13 = por %p2237_p1, %p2236_p11 }
 0x64b   : > { %p2239_p6 = pnand %p2238_p13, %p2232_p7 }
 0x64d   : > { %2242 = shalt.err (!%p2239_p6)
}
 0x64e   : > { %1738 = dma.vmem_to_hbm [thread:$0]  (%p3161_p0), %s2992_s3, 128, %s2989_s9, %s1276_s4  }
 0x64f PF: > { %p1783_p4 = scmp.ge.s32.totalorder %s2365_s19, 2  ;;  %s1318_s20 = sand.u32 1, %s2325_s30  }
 0x650   : > { %p3163_p3 = scmp.ne.s32.totalorder %s3137_s24, 0  ;;  %s1319_s27 = scalar_lea.sflag [#allocation8], %s1318_s20 }
 0x652   : > { %p1768_p10 = pnand %p1783_p4, %p3163_p3 }
 0x654   : > { %2316 = dma.done.wait (!%p1768_p10), %s1319_s27, 128  }
 0x655   : > { %2318 = vsyncadd (!%p1768_p10), %s1319_s27, 4294967168  ;;  %s1328_s22 = scalar_lea.sflag [#allocation22], %s1318_s20 }
 0x656   : > { %2320 = dma.done.wait (!%p1768_p10), %s1328_s22, 128  }
 0x657   : > { %2322 = vsyncadd (!%p1768_p10), %s1328_s22, 4294967168  ;;  %s37_s19 = sadd.s32 1, %s2365_s19   ;;  %s3164_s12 = sld [smem:[#allocation32_spill]] }
 0x658   : > { %p34_p12 = scmp.ge.s32.totalorder %s37_s19, 6   ;;  %s3165_s24 = sld [smem:[#allocation38_spill]] }
 0x659   : > { %s3166_s30 = smov %s2329_s10  ;;  %s3167_s10 = smov %s2333_s11 }
 0x65a   : > { %s3168_s11 = smov %s2760_s21  ;;  %s3169_s13 = smov %s2345_s14 }
 0x65b   : > { %s3170_s14 = smov %s2757_s5  ;;  %s3171_s15 = smov %s2357_s17 }
 0x65c   : > { %s3172_s16 = smov %s2361_s18  ;;  %s3173_s17 = smov %s3176_s8 }
 0x65d   :  { %36 = sbr.rel (!%p34_p12) target bundleno = 28 (0x1c), region = 171 }
 0x65e   : > { %s3174_s18 = smov %s3165_s24 }
 0x664   :  { %1333 = vsyncpa [#allocation7], 1 }
 0x665   :  { %1335 = vsyncpa [#allocation7 + $0x1], 1 }
 0x666   :  { %1336 = vsyncpa [#allocation10], 1 }
 0x667   :  { %1338 = vsyncpa [#allocation10 + $0x1], 1 }
 0x668   :  { %1339 = vsyncpa [#allocation13], 1 }
 0x669   :  { %1341 = vsyncpa [#allocation13 + $0x1], 1 }
 0x66a   :  { %1342 = vsyncpa [#allocation16], 1 }
 0x66b   :  { %1343 = vsyncpa [#allocation19], 1 }
 0x66c   :  { %1344 = vsyncpa [#allocation8], 1 }
 0x66d   :  { %1346 = vsyncpa [#allocation8 + $0x1], 1 }
 0x66e   :  { %1347 = vsyncpa [#allocation22], 1 }
 0x66f   :  { %1349 = vsyncpa [#allocation22 + $0x1], 1 }

</bundles_post_ra>
